<compile_context>
chip_gen: v5e
topology: v5e:2x2
jax: 0.10.0
libtpu: 0.0.40
codegen_flags: <defaults>
</compile_context>

<pallas_src>
import functools

import jax
import jax.numpy as jnp
from jax.experimental import pallas as pl
from jax.experimental.pallas import tpu as pltpu


def _fused_conv_block_kernel(x_ref, w1_ref, b1_ref, w2_ref, b2_ref, mask_ref,
                             o_ref, p1_ref, p2_ref, *, H, W, Cin, Cmid):
    # Per grid step (one batch element):
    #   x_ref   : (1, Cin, Lx)   flat zero-padded input with halo slack
    #   w1_ref  : (Cmid, 9*Cin)  conv1 weights, columns ordered (dy, dx, cin)
    #   b1_ref  : (Cmid, 1)
    #   w2_ref  : (Cout, 9*Cmid) conv2 weights, columns ordered (dy, dx, ch)
    #   b2_ref  : (Cout, 1)
    #   mask_ref: (1, Lh)        1.0 on interior cells of the padded grid
    #   o_ref   : (1, Cout, Lp)  conv2+ReLU output on the padded flat grid
    #   p1_ref  : (9*Cin, Lh)    VMEM im2col scratch for conv1
    #   p2_ref  : (9*Cmid, Lp)   VMEM im2col scratch for conv2
    Hp, Wp = H + 2, W + 2
    Lp = Hp * Wp
    S = Wp + 1
    Lh = Lp + 2 * S

    x = x_ref[0]                                            # (Cin, Lx)

    # ---- conv1: build im2col patches with 9 static lane-offset slices, then
    # one MXU matmul. Output index p is a cell of the padded grid.
    for k in range(9):
        dy, dx = divmod(k, 3)
        a = dy * Wp + dx
        p1_ref[k * Cin:(k + 1) * Cin, :] = x[:, a:a + Lh]
    h = jnp.dot(w1_ref[...], p1_ref[...],
                preferred_element_type=jnp.float32)          # (Cmid, Lh)
    h = jnp.maximum(h + b1_ref[...], 0.0)
    # Zero the 1-pixel halo ring (and the slack tail) which hold wrap-around
    # garbage: h is now exactly the zero-padded conv1 activation, kept in VMEM.
    h = h * mask_ref[...]

    # ---- conv2: same im2col trick on the VMEM-resident intermediate.
    for k in range(9):
        dy, dx = divmod(k, 3)
        a = dy * Wp + dx
        p2_ref[k * Cmid:(k + 1) * Cmid, :] = h[:, a:a + Lp]
    y = jnp.dot(w2_ref[...], p2_ref[...],
                preferred_element_type=jnp.float32)          # (Cout, Lp)
    y = jnp.maximum(y + b2_ref[...], 0.0)
    o_ref[0] = y.astype(o_ref.dtype)


@jax.jit
def audio_conv_block(x_nchw, params):
    """Forward pass of AudioConvBlock. Input/output are NCHW like PyTorch."""
    N, Cin, H, W = x_nchw.shape
    Cmid = params["w1"].shape[0]          # 64
    Cout = params["w2"].shape[0]          # == Cin
    Hp, Wp = H + 2, W + 2
    Lp = Hp * Wp                          # padded flat spatial length
    S = Wp + 1                            # halo slack for lane-offset slices
    Lh = Lp + 2 * S                       # conv1 output length
    Lx = Lh + 2 * S                       # conv1 input length

    x = x_nchw.astype(jnp.float32)
    # Zero-pad spatially, flatten the padded grid to one lane-dense axis, and
    # add slack so all 9 lane-offset slices are in-bounds static slices.
    x_pad = jnp.pad(x, ((0, 0), (0, 0), (1, 1), (1, 1))).reshape(N, Cin, Lp)
    x_ext = jnp.pad(x_pad, ((0, 0), (0, 0), (S, Lx - Lp - S)))

    # Pack weights OIHW -> (O, dy, dx, I) -> (O, 9*I) to match the im2col
    # patch-row ordering; biases as (O, 1) columns (lane-broadcast in kernel).
    w1m = jnp.transpose(params["w1"], (0, 2, 3, 1)).reshape(Cmid, 9 * Cin)
    w2m = jnp.transpose(params["w2"], (0, 2, 3, 1)).reshape(Cout, 9 * Cmid)
    w1m = w1m.astype(jnp.float32)
    w2m = w2m.astype(jnp.float32)
    b1 = params["b1"].reshape(Cmid, 1).astype(jnp.float32)
    b2 = params["b2"].reshape(Cout, 1).astype(jnp.float32)

    # Interior mask of the padded grid (1 inside, 0 on the halo / slack tail).
    mask = jnp.zeros((Hp, Wp), jnp.float32).at[1:H + 1, 1:W + 1].set(1.0)
    mask = jnp.pad(mask.reshape(1, Lp), ((0, 0), (0, Lh - Lp)))

    kernel = functools.partial(_fused_conv_block_kernel,
                               H=H, W=W, Cin=Cin, Cmid=Cmid)
    y_flat = pl.pallas_call(
        kernel,
        out_shape=jax.ShapeDtypeStruct((N, Cout, Lp), jnp.float32),
        grid=(N,),
        in_specs=[
            pl.BlockSpec((1, Cin, Lx), lambda n: (n, 0, 0)),
            pl.BlockSpec((Cmid, 9 * Cin), lambda n: (0, 0)),
            pl.BlockSpec((Cmid, 1), lambda n: (0, 0)),
            pl.BlockSpec((Cout, 9 * Cmid), lambda n: (0, 0)),
            pl.BlockSpec((Cout, 1), lambda n: (0, 0)),
            pl.BlockSpec((1, Lh), lambda n: (0, 0)),
        ],
        out_specs=pl.BlockSpec((1, Cout, Lp), lambda n: (n, 0, 0)),
        scratch_shapes=[
            pltpu.VMEM((9 * Cin, Lh), jnp.float32),
            pltpu.VMEM((9 * Cmid, Lp), jnp.float32),
        ],
        compiler_params=pltpu.CompilerParams(
            dimension_semantics=("parallel",),
            vmem_limit_bytes=32 * 1024 * 1024,
        ),
    )(x_ext, w1m, b1, w2m, b2, mask)

    # (N, Cout, Hp*Wp) is NCHW-flat on the padded grid; crop away the halo.
    return y_flat.reshape(N, Cout, Hp, Wp)[:, :, :H, :W]


def init_params(key, in_channels=1):
    """Deterministic synthetic parameters matching the PyTorch module shapes.

    PyTorch layout: conv1.weight (64, Cin, 3, 3), conv1.bias (64,)
                    conv2.weight (Cin, 64, 3, 3), conv2.bias (Cin,)
    """
    k1, k2, k3, k4 = jax.random.split(key, 4)
    w1 = jax.random.normal(k1, (64, in_channels, 3, 3), jnp.float32) * 0.1
    b1 = jax.random.normal(k2, (64,), jnp.float32) * 0.1
    w2 = jax.random.normal(k3, (in_channels, 64, 3, 3), jnp.float32) * 0.1
    b2 = jax.random.normal(k4, (in_channels,), jnp.float32) * 0.1
    return {"w1": w1, "b1": b1, "w2": w2, "b2": b2}


def _reference(x_nchw, params):
    """Pure-JAX reference using lax.conv_general_dilated."""
    x = jnp.transpose(x_nchw, (0, 2, 3, 1)).astype(jnp.float32)
    dn = ("NHWC", "HWIO", "NHWC")
    w1 = jnp.transpose(params["w1"], (2, 3, 1, 0))
    w2 = jnp.transpose(params["w2"], (2, 3, 1, 0))
    h = jax.lax.conv_general_dilated(
        x, w1, (1, 1), "SAME", dimension_numbers=dn) + params["b1"]
    h = jnp.maximum(h, 0.0)
    y = jax.lax.conv_general_dilated(
        h, w2, (1, 1), "SAME", dimension_numbers=dn) + params["b2"]
    y = jnp.maximum(y, 0.0)
    return jnp.transpose(y, (0, 3, 1, 2))


if __name__ == "__main__":
    key = jax.random.PRNGKey(0)
    kx, kp = jax.random.split(key)

    N, C, H, W = 2, 1, 16, 16          # AudioConvBlock default: in_channels=1
    x = jax.random.normal(kx, (N, C, H, W), jnp.float32)
    params = init_params(kp, in_channels=C)

    out = jax.block_until_ready(audio_conv_block(x, params))
    ref = jax.block_until_ready(_reference(x, params))

    assert out.shape == (N, C, H, W)
    assert jnp.allclose(out, ref, rtol=1e-3, atol=1e-4), "mismatch vs reference"

    print("KERNEL_OK")
</pallas_src>

<mosaic_0001>
module attributes {stable_mosaic.version = 11 : i64} {
  func.func @_fused_conv_block_kernel(%arg0: i32, %arg1: memref<1x1x400xf32, #tpu.memory_space<vmem>>, %arg2: memref<64x9xf32, #tpu.memory_space<vmem>>, %arg3: memref<64x1xf32, #tpu.memory_space<vmem>>, %arg4: memref<1x576xf32, #tpu.memory_space<vmem>>, %arg5: memref<1x1xf32, #tpu.memory_space<vmem>>, %arg6: memref<1x362xf32, #tpu.memory_space<vmem>>, %arg7: memref<1x1x324xf32, #tpu.memory_space<vmem>>, %arg8: memref<9x362xf32, #tpu.memory_space<vmem>>, %arg9: memref<576x324xf32, #tpu.memory_space<vmem>>) attributes {dimension_semantics = [#tpu.dimension_semantics<parallel>], iteration_bounds = array<i64: 2>, scalar_prefetch = 0 : i64, scratch_operands = 2 : i64, tpu.core_type = #tpu.core_type<tc>, window_params = [{transform_indices = @transform_0, window_bounds = array<i64: 1, 1, 400>}, {pipeline_mode = #tpu.pipeline_mode<synchronous>, transform_indices = @transform_1, window_bounds = array<i64: 64, 9>}, {pipeline_mode = #tpu.pipeline_mode<synchronous>, transform_indices = @transform_2, window_bounds = array<i64: 64, 1>}, {pipeline_mode = #tpu.pipeline_mode<synchronous>, transform_indices = @transform_3, window_bounds = array<i64: 1, 576>}, {pipeline_mode = #tpu.pipeline_mode<synchronous>, transform_indices = @transform_4, window_bounds = array<i64: 1, 1>}, {pipeline_mode = #tpu.pipeline_mode<synchronous>, transform_indices = @transform_5, window_bounds = array<i64: 1, 362>}, {transform_indices = @transform_6, window_bounds = array<i64: 1, 1, 324>}]} {
    %c0 = arith.constant 0 : index
    %c0_0 = arith.constant 0 : index
    %c0_1 = arith.constant 0 : index
    %0 = vector.load %arg1[%c0, %c0_0, %c0_1] : memref<1x1x400xf32, #tpu.memory_space<vmem>>, vector<1x1x400xf32>
    %1 = vector.shape_cast %0 : vector<1x1x400xf32> to vector<1x400xf32>
    %2 = vector.extract_strided_slice %1 {offsets = [0, 0], sizes = [1, 362], strides = [1, 1]} : vector<1x400xf32> to vector<1x362xf32>
    %c0_2 = arith.constant 0 : index
    %c0_3 = arith.constant 0 : index
    %3 = vector.load %arg8[%c0_2, %c0_3] : memref<9x362xf32, #tpu.memory_space<vmem>>, vector<1x362xf32>
    tpu.vector_store %arg8[%c0_2, %c0_3], %2 {strides = array<i32>} : memref<9x362xf32, #tpu.memory_space<vmem>>, vector<1x362xf32>,
    %4 = vector.extract_strided_slice %1 {offsets = [0, 1], sizes = [1, 362], strides = [1, 1]} : vector<1x400xf32> to vector<1x362xf32>
    %c1 = arith.constant 1 : index
    %c0_4 = arith.constant 0 : index
    %5 = vector.load %arg8[%c1, %c0_4] : memref<9x362xf32, #tpu.memory_space<vmem>>, vector<1x362xf32>
    tpu.vector_store %arg8[%c1, %c0_4], %4 {strides = array<i32>} : memref<9x362xf32, #tpu.memory_space<vmem>>, vector<1x362xf32>,
    %6 = vector.extract_strided_slice %1 {offsets = [0, 2], sizes = [1, 362], strides = [1, 1]} : vector<1x400xf32> to vector<1x362xf32>
    %c2 = arith.constant 2 : index
    %c0_5 = arith.constant 0 : index
    %7 = vector.load %arg8[%c2, %c0_5] : memref<9x362xf32, #tpu.memory_space<vmem>>, vector<1x362xf32>
    tpu.vector_store %arg8[%c2, %c0_5], %6 {strides = array<i32>} : memref<9x362xf32, #tpu.memory_space<vmem>>, vector<1x362xf32>,
    %8 = vector.extract_strided_slice %1 {offsets = [0, 18], sizes = [1, 362], strides = [1, 1]} : vector<1x400xf32> to vector<1x362xf32>
    %c3 = arith.constant 3 : index
    %c0_6 = arith.constant 0 : index
    %9 = vector.load %arg8[%c3, %c0_6] : memref<9x362xf32, #tpu.memory_space<vmem>>, vector<1x362xf32>
    tpu.vector_store %arg8[%c3, %c0_6], %8 {strides = array<i32>} : memref<9x362xf32, #tpu.memory_space<vmem>>, vector<1x362xf32>,
    %10 = vector.extract_strided_slice %1 {offsets = [0, 19], sizes = [1, 362], strides = [1, 1]} : vector<1x400xf32> to vector<1x362xf32>
    %c4 = arith.constant 4 : index
    %c0_7 = arith.constant 0 : index
    %11 = vector.load %arg8[%c4, %c0_7] : memref<9x362xf32, #tpu.memory_space<vmem>>, vector<1x362xf32>
    tpu.vector_store %arg8[%c4, %c0_7], %10 {strides = array<i32>} : memref<9x362xf32, #tpu.memory_space<vmem>>, vector<1x362xf32>,
    %12 = vector.extract_strided_slice %1 {offsets = [0, 20], sizes = [1, 362], strides = [1, 1]} : vector<1x400xf32> to vector<1x362xf32>
    %c5 = arith.constant 5 : index
    %c0_8 = arith.constant 0 : index
    %13 = vector.load %arg8[%c5, %c0_8] : memref<9x362xf32, #tpu.memory_space<vmem>>, vector<1x362xf32>
    tpu.vector_store %arg8[%c5, %c0_8], %12 {strides = array<i32>} : memref<9x362xf32, #tpu.memory_space<vmem>>, vector<1x362xf32>,
    %14 = vector.extract_strided_slice %1 {offsets = [0, 36], sizes = [1, 362], strides = [1, 1]} : vector<1x400xf32> to vector<1x362xf32>
    %c6 = arith.constant 6 : index
    %c0_9 = arith.constant 0 : index
    %15 = vector.load %arg8[%c6, %c0_9] : memref<9x362xf32, #tpu.memory_space<vmem>>, vector<1x362xf32>
    tpu.vector_store %arg8[%c6, %c0_9], %14 {strides = array<i32>} : memref<9x362xf32, #tpu.memory_space<vmem>>, vector<1x362xf32>,
    %16 = vector.extract_strided_slice %1 {offsets = [0, 37], sizes = [1, 362], strides = [1, 1]} : vector<1x400xf32> to vector<1x362xf32>
    %c7 = arith.constant 7 : index
    %c0_10 = arith.constant 0 : index
    %17 = vector.load %arg8[%c7, %c0_10] : memref<9x362xf32, #tpu.memory_space<vmem>>, vector<1x362xf32>
    tpu.vector_store %arg8[%c7, %c0_10], %16 {strides = array<i32>} : memref<9x362xf32, #tpu.memory_space<vmem>>, vector<1x362xf32>,
    %18 = vector.extract_strided_slice %1 {offsets = [0, 38], sizes = [1, 362], strides = [1, 1]} : vector<1x400xf32> to vector<1x362xf32>
    %c8 = arith.constant 8 : index
    %c0_11 = arith.constant 0 : index
    %19 = vector.load %arg8[%c8, %c0_11] : memref<9x362xf32, #tpu.memory_space<vmem>>, vector<1x362xf32>
    tpu.vector_store %arg8[%c8, %c0_11], %18 {strides = array<i32>} : memref<9x362xf32, #tpu.memory_space<vmem>>, vector<1x362xf32>,
    %c0_12 = arith.constant 0 : index
    %c0_13 = arith.constant 0 : index
    %20 = vector.load %arg2[%c0_12, %c0_13] : memref<64x9xf32, #tpu.memory_space<vmem>>, vector<64x9xf32>
    %c0_14 = arith.constant 0 : index
    %c0_15 = arith.constant 0 : index
    %21 = vector.load %arg8[%c0_14, %c0_15] : memref<9x362xf32, #tpu.memory_space<vmem>>, vector<9x362xf32>
    %cst = arith.constant dense<0.000000e+00> : vector<64x362xf32>
    %22 = tpu.matmul %20, %21, %cst {dimension_numbers = #tpu.dot_dimension_numbers<[1], [0], [0], [1], [0, 0, 1, 1], [], []>} : vector<64x9xf32>, vector<9x362xf32>, vector<64x362xf32> -> vector<64x362xf32>
    %c0_16 = arith.constant 0 : index
    %c0_17 = arith.constant 0 : index
    %23 = vector.load %arg3[%c0_16, %c0_17] : memref<64x1xf32, #tpu.memory_space<vmem>>, vector<64x1xf32>
    %24 = vector.broadcast %23 : vector<64x1xf32> to vector<64x362xf32>
    %25 = arith.addf %22, %24 : vector<64x362xf32>
    %cst_18 = arith.constant 0.000000e+00 : f32
    %26 = vector.broadcast %cst_18 : f32 to vector<64x362xf32>
    %27 = arith.maximumf %25, %26 : vector<64x362xf32>
    %c0_19 = arith.constant 0 : index
    %c0_20 = arith.constant 0 : index
    %28 = vector.load %arg6[%c0_19, %c0_20] : memref<1x362xf32, #tpu.memory_space<vmem>>, vector<1x362xf32>
    %29 = vector.broadcast %28 : vector<1x362xf32> to vector<64x362xf32>
    %30 = arith.mulf %27, %29 : vector<64x362xf32>
    %31 = vector.extract_strided_slice %30 {offsets = [0, 0], sizes = [64, 324], strides = [1, 1]} : vector<64x362xf32> to vector<64x324xf32>
    %c0_21 = arith.constant 0 : index
    %c0_22 = arith.constant 0 : index
    %32 = vector.load %arg9[%c0_21, %c0_22] : memref<576x324xf32, #tpu.memory_space<vmem>>, vector<64x324xf32>
    tpu.vector_store %arg9[%c0_21, %c0_22], %31 {strides = array<i32>} : memref<576x324xf32, #tpu.memory_space<vmem>>, vector<64x324xf32>,
    %33 = vector.extract_strided_slice %30 {offsets = [0, 1], sizes = [64, 324], strides = [1, 1]} : vector<64x362xf32> to vector<64x324xf32>
    %c64 = arith.constant 64 : index
    %c0_23 = arith.constant 0 : index
    %34 = vector.load %arg9[%c64, %c0_23] : memref<576x324xf32, #tpu.memory_space<vmem>>, vector<64x324xf32>
    tpu.vector_store %arg9[%c64, %c0_23], %33 {strides = array<i32>} : memref<576x324xf32, #tpu.memory_space<vmem>>, vector<64x324xf32>,
    %35 = vector.extract_strided_slice %30 {offsets = [0, 2], sizes = [64, 324], strides = [1, 1]} : vector<64x362xf32> to vector<64x324xf32>
    %c128 = arith.constant 128 : index
    %c0_24 = arith.constant 0 : index
    %36 = vector.load %arg9[%c128, %c0_24] : memref<576x324xf32, #tpu.memory_space<vmem>>, vector<64x324xf32>
    tpu.vector_store %arg9[%c128, %c0_24], %35 {strides = array<i32>} : memref<576x324xf32, #tpu.memory_space<vmem>>, vector<64x324xf32>,
    %37 = vector.extract_strided_slice %30 {offsets = [0, 18], sizes = [64, 324], strides = [1, 1]} : vector<64x362xf32> to vector<64x324xf32>
    %c192 = arith.constant 192 : index
    %c0_25 = arith.constant 0 : index
    %38 = vector.load %arg9[%c192, %c0_25] : memref<576x324xf32, #tpu.memory_space<vmem>>, vector<64x324xf32>
    tpu.vector_store %arg9[%c192, %c0_25], %37 {strides = array<i32>} : memref<576x324xf32, #tpu.memory_space<vmem>>, vector<64x324xf32>,
    %39 = vector.extract_strided_slice %30 {offsets = [0, 19], sizes = [64, 324], strides = [1, 1]} : vector<64x362xf32> to vector<64x324xf32>
    %c256 = arith.constant 256 : index
    %c0_26 = arith.constant 0 : index
    %40 = vector.load %arg9[%c256, %c0_26] : memref<576x324xf32, #tpu.memory_space<vmem>>, vector<64x324xf32>
    tpu.vector_store %arg9[%c256, %c0_26], %39 {strides = array<i32>} : memref<576x324xf32, #tpu.memory_space<vmem>>, vector<64x324xf32>,
    %41 = vector.extract_strided_slice %30 {offsets = [0, 20], sizes = [64, 324], strides = [1, 1]} : vector<64x362xf32> to vector<64x324xf32>
    %c320 = arith.constant 320 : index
    %c0_27 = arith.constant 0 : index
    %42 = vector.load %arg9[%c320, %c0_27] : memref<576x324xf32, #tpu.memory_space<vmem>>, vector<64x324xf32>
    tpu.vector_store %arg9[%c320, %c0_27], %41 {strides = array<i32>} : memref<576x324xf32, #tpu.memory_space<vmem>>, vector<64x324xf32>,
    %43 = vector.extract_strided_slice %30 {offsets = [0, 36], sizes = [64, 324], strides = [1, 1]} : vector<64x362xf32> to vector<64x324xf32>
    %c384 = arith.constant 384 : index
    %c0_28 = arith.constant 0 : index
    %44 = vector.load %arg9[%c384, %c0_28] : memref<576x324xf32, #tpu.memory_space<vmem>>, vector<64x324xf32>
    tpu.vector_store %arg9[%c384, %c0_28], %43 {strides = array<i32>} : memref<576x324xf32, #tpu.memory_space<vmem>>, vector<64x324xf32>,
    %45 = vector.extract_strided_slice %30 {offsets = [0, 37], sizes = [64, 324], strides = [1, 1]} : vector<64x362xf32> to vector<64x324xf32>
    %c448 = arith.constant 448 : index
    %c0_29 = arith.constant 0 : index
    %46 = vector.load %arg9[%c448, %c0_29] : memref<576x324xf32, #tpu.memory_space<vmem>>, vector<64x324xf32>
    tpu.vector_store %arg9[%c448, %c0_29], %45 {strides = array<i32>} : memref<576x324xf32, #tpu.memory_space<vmem>>, vector<64x324xf32>,
    %47 = vector.extract_strided_slice %30 {offsets = [0, 38], sizes = [64, 324], strides = [1, 1]} : vector<64x362xf32> to vector<64x324xf32>
    %c512 = arith.constant 512 : index
    %c0_30 = arith.constant 0 : index
    %48 = vector.load %arg9[%c512, %c0_30] : memref<576x324xf32, #tpu.memory_space<vmem>>, vector<64x324xf32>
    tpu.vector_store %arg9[%c512, %c0_30], %47 {strides = array<i32>} : memref<576x324xf32, #tpu.memory_space<vmem>>, vector<64x324xf32>,
    %c0_31 = arith.constant 0 : index
    %c0_32 = arith.constant 0 : index
    %49 = vector.load %arg4[%c0_31, %c0_32] : memref<1x576xf32, #tpu.memory_space<vmem>>, vector<1x576xf32>
    %c0_33 = arith.constant 0 : index
    %c0_34 = arith.constant 0 : index
    %50 = vector.load %arg9[%c0_33, %c0_34] : memref<576x324xf32, #tpu.memory_space<vmem>>, vector<576x324xf32>
    %cst_35 = arith.constant dense<0.000000e+00> : vector<1x324xf32>
    %51 = tpu.matmul %49, %50, %cst_35 {dimension_numbers = #tpu.dot_dimension_numbers<[1], [0], [0], [1], [0, 0, 1, 1], [], []>} : vector<1x576xf32>, vector<576x324xf32>, vector<1x324xf32> -> vector<1x324xf32>
    %c0_36 = arith.constant 0 : index
    %c0_37 = arith.constant 0 : index
    %52 = vector.load %arg5[%c0_36, %c0_37] : memref<1x1xf32, #tpu.memory_space<vmem>>, vector<1x1xf32>
    %53 = vector.broadcast %52 : vector<1x1xf32> to vector<1x324xf32>
    %54 = arith.addf %51, %53 : vector<1x324xf32>
    %cst_38 = arith.constant 0.000000e+00 : f32
    %55 = vector.broadcast %cst_38 : f32 to vector<1x324xf32>
    %56 = arith.maximumf %54, %55 : vector<1x324xf32>
    %c0_39 = arith.constant 0 : index
    %c0_40 = arith.constant 0 : index
    %c0_41 = arith.constant 0 : index
    %57 = vector.load %arg7[%c0_39, %c0_40, %c0_41] : memref<1x1x324xf32, #tpu.memory_space<vmem>>, vector<1x1x324xf32>
    %58 = vector.shape_cast %57 : vector<1x1x324xf32> to vector<1x324xf32>
    %59 = vector.shape_cast %56 : vector<1x324xf32> to vector<1x1x324xf32>
    tpu.vector_store %arg7[%c0_39, %c0_40, %c0_41], %59 {strides = array<i32>} : memref<1x1x324xf32, #tpu.memory_space<vmem>>, vector<1x1x324xf32>,
    return
  }
  func.func @transform_0(%arg0: i32) -> (i32, i32, i32) {
    %c0_i32 = arith.constant 0 : i32
    %c0_i32_0 = arith.constant 0 : i32
    %c0_i32_1 = arith.constant 0 : i32
    return %arg0, %c0_i32, %c0_i32_0 : i32, i32, i32
  }
  func.func @transform_1(%arg0: i32) -> (i32, i32) {
    %c0_i32 = arith.constant 0 : i32
    %c0_i32_0 = arith.constant 0 : i32
    %c0_i32_1 = arith.constant 0 : i32
    return %c0_i32, %c0_i32_0 : i32, i32
  }
  func.func @transform_2(%arg0: i32) -> (i32, i32) {
    %c0_i32 = arith.constant 0 : i32
    %c0_i32_0 = arith.constant 0 : i32
    %c0_i32_1 = arith.constant 0 : i32
    return %c0_i32, %c0_i32_0 : i32, i32
  }
  func.func @transform_3(%arg0: i32) -> (i32, i32) {
    %c0_i32 = arith.constant 0 : i32
    %c0_i32_0 = arith.constant 0 : i32
    %c0_i32_1 = arith.constant 0 : i32
    return %c0_i32, %c0_i32_0 : i32, i32
  }
  func.func @transform_4(%arg0: i32) -> (i32, i32) {
    %c0_i32 = arith.constant 0 : i32
    %c0_i32_0 = arith.constant 0 : i32
    %c0_i32_1 = arith.constant 0 : i32
    return %c0_i32, %c0_i32_0 : i32, i32
  }
  func.func @transform_5(%arg0: i32) -> (i32, i32) {
    %c0_i32 = arith.constant 0 : i32
    %c0_i32_0 = arith.constant 0 : i32
    %c0_i32_1 = arith.constant 0 : i32
    return %c0_i32, %c0_i32_0 : i32, i32
  }
  func.func @transform_6(%arg0: i32) -> (i32, i32, i32) {
    %c0_i32 = arith.constant 0 : i32
    %c0_i32_0 = arith.constant 0 : i32
    %c0_i32_1 = arith.constant 0 : i32
    return %arg0, %c0_i32, %c0_i32_0 : i32, i32, i32
  }
}

</mosaic_0001>

<bundles_post_ra>
// kernel: audio_conv_block.1
= control target key start
LH: loop header
LB: loop body
LE: loop exit
PB: predicated region body
PF: predicated region fallthrough
CT: control target
= control target key end

     0   :  { %s2279_s23 = smov 0   ;;  %s3448_s0 = inlined_call_operand.vmem [shape: f32[2,1,400], index: 0, kind: input, shape index: {}]   ;;  %s3449_s1 = inlined_call_operand.vmem [shape: f32[64,9], index: 1, kind: input, shape index: {}]   ;;  %s3450_s2 = inlined_call_operand.vmem [shape: f32[64,1], index: 2, kind: input, shape index: {}]   ;;  %s3451_s3 = inlined_call_operand.vmem [shape: f32[1,576], index: 3, kind: input, shape index: {}]   ;;  %s3452_s4 = inlined_call_operand.<no memory space> [shape: f32[1,1], index: 4, kind: input, shape index: {}]   ;;  %s3453_s5 = inlined_call_operand.vmem [shape: f32[1,362], index: 5, kind: input, shape index: {}]   ;;  %s3454_s6 = inlined_call_operand.vmem [shape: f32[2,1,324], index: 6, kind: output, shape index: {}]  }
   0x1   :  { %v11_v0 = vstv %s3452_s4 }
   0x2   :  { %12 = vst [vmem:[#allocation4] sm:$0x1] %v11_v0 }
   0x3 LB: > { %s2155_s24 = sadd.s32 4294967295, %s2230_s23   ;;  %p2159_p0 = scmp.ge.s32.totalorder %s2230_s23, 1  ;;  %s2230_s23 = sphi %s2279_s23, %s18_s23  }
   0x4   : > { %p213_p1 = scmp.lt.s32.totalorder %s2230_s23, 3 }
   0x6   : > { %p214_p2 = pnand %p2159_p0, %p213_p1 }
   0x8   : > { %217 = sbr.rel (%p214_p2) target bundleno = 1104 (0x450), region = 44 }
   0xd   : > { %p241_p3 = scmp.lt.s32.totalorder %s2155_s24, 1  ;;  %v3455_v1 = vlaneseq  ;;  %s2232_s28 = smov 110   ;;  %vm296_vm1 = vcmask 883712   ;;  %vm305_vm2 = vcmask 752640   ;;  %v345_v10 = vld [vmem:[%s3450_s2 + $0x10] sm:$0xff]  ;;  %v2240_v11 = vmov 0  }
   0xe   : > { %s2233_s29 = smov 127   ;;  %s2234_s30 = smov 108   ;;  %2215 = vset.pattern.permute.xlu1 %v2240_v11  ;;  %2213 = vset.pattern.permute.xlu2 %v2240_v11  ;;  %vm278_vm3 = vcmask 900096   ;;  %vm260_vm4 = vcmask 1039360   ;;  %v347_v18 = vld [vmem:[%s3450_s2 + $0x20] sm:$0xff]  ;;  %vm287_vm5 = vcmask 891904  }
   0xf   : > { %s3482_s24 = smov (!%p241_p3, %s2155_s24), 1  ;;  %vm2294_vm0 = vcmp.lt.s32.totalorder %v3455_v1, 362  ;;  %s2235_s7 = smov 109   ;;  %2214 = vset.pattern.permute.xlu0 %v2240_v11  ;;  %vm269_vm6 = vcmask 1031168   ;;  %v350_v23 = vld [vmem:[%s3450_s2 + $0x38] sm:$0xff]  ;;  %vm323_vm7 = vcmask 736256  }
  0x10   : > { %s2160_s4 = sshll.u32 %s3482_s24, 2  ;;  %s2236_s8 = smov 126   ;;  %vm314_vm8 = vcmask 744448   ;;  %v343_v32 = vld [vmem:[%s3450_s2] sm:$0xff]  ;;  %vm416_vm9 = vcmask 1040384   ;;  %vm391_vm10 = vcmask 72704  }
  0x11   : > { %s244_s27 = scalar_lea.vmem %s3448_s0, %s2160_s4  ;;  %s2237_s9 = smov 92   ;;  %v329_v35 = vld [vmem:[%s3449_s1] sm:$0xff]  ;;  %v336_v37 = vld [vmem:[%s3449_s1 + $0x38] sm:$0xff]  ;;  %v330_v42 = vld [vmem:[%s3449_s1 + $0x8] sm:$0xff]  ;;  %vm607_vm11 = vcmask 556032   ;;  %vm1784_vm12 = vcmask 523264  }
  0x12   : > { %v249_v2 = vld [vmem:[%s244_s27] sm:$0xf]  ;;  %s2238_s10 = smov 90   ;;  %s2239_s11 = smov 91   ;;  %v346_v40 = vld [vmem:[%s3450_s2 + $0x18] sm:$0xff]  ;;  %v348_v43 = vld [vmem:[%s3450_s2 + $0x28] sm:$0xff] }
  0x13   : > { %275 = vrot.lane.b32.xlu1 %v249_v2, %s2232_s28  ;;  %257 = vrot.lane.b32.xlu0 %v249_v2, %s2233_s29  ;;  %254 = vst.msk [vmem:[#allocation2] ss:$8 sm:$0x7] %vm2294_vm0, %v249_v2  ;;  %v331_v44 = vld [vmem:[%s3449_s1 + $0x10] sm:$0xff]  ;;  %v344_v45 = vld [vmem:[%s3450_s2 + $0x8] sm:$0xff]  ;;  %vm2096_vm13 = vcmask 1041408  }
  0x14   : > { %293 = vrot.lane.b32.xlu2 %v249_v2, %s2234_s30  ;;  %v332_v46 = vld [vmem:[%s3449_s1 + $0x18] sm:$0xff]  ;;  %v349_v47 = vld [vmem:[%s3450_s2 + $0x30] sm:$0xff]  ;;  %v333_v48 = vld [vmem:[%s3449_s1 + $0x20] sm:$0xff] }
  0x15   : > { %v334_v49 = vld [vmem:[%s3449_s1 + $0x28] sm:$0xff]  ;;  %v335_v50 = vld [vmem:[%s3449_s1 + $0x30] sm:$0xff]  ;;  %v573_v53 = vld [vmem:[%s3453_s5] sm:$0x7] }
  0x16   : > { %v2417_v58 = vperm.slane %v573_v53, 0 }
  0x1b   : > { %284 = vrot.lane.b32.xlu1 %v249_v2, %s2235_s7  ;;  %266 = vrot.lane.b32.xlu0 %v249_v2, %s2236_s8 }
  0x1c   : > { %302 = vrot.lane.b32.xlu2 %v249_v2, %s2237_s9 }
  0x23   : > { %320 = vrot.lane.b32.xlu1 %v249_v2, %s2238_s10  ;;  %311 = vrot.lane.b32.xlu0 %v249_v2, %s2239_s11 }
  0x24   : > { %353 = vperm.xlu2 %2213, %v343_v32  }
  0x2b   : > { %363 = vperm.xlu1 %2215, %v345_v10   ;;  %358 = vperm.xlu0 %2214, %v344_v45  }
  0x2c   : > { %368 = vperm.xlu2 %2213, %v346_v40  }
  0x33   : > { %373 = vperm.xlu1 %2215, %v347_v18   ;;  %383 = vperm.xlu0 %2214, %v349_v47  }
  0x34   : > { %378 = vperm.xlu2 %2213, %v348_v43  }
  0x3b   : > { %388 = vperm.xlu1 %2215, %v350_v23  }
  0x6e   : > { %v294_v4 = vpop.permute.xlu2 %293 }
  0x6f   : > { %v295_v5 = vrot.slane %v294_v4, 1 }
  0x71   : > { %v297_v6 = vsel %vm296_vm1, %v294_v4, %v295_v5  ;;  %v2430_v4 = vperm.slane %v573_v53, 2 }
  0x72   : > { %300 = vst.msk [vmem:[#allocation2 + $0x5] ss:$8 sm:$0x7] %vm2294_vm0, %v297_v6 }
  0x76   : > { %v303_v7 = vpop.permute.xlu2 %302 }
  0x77   : > { %v304_v8 = vrot.slane %v303_v7, 1 }
  0x79   : > { %v306_v9 = vsel %vm305_vm2, %v303_v7, %v304_v8 }
  0x7a   : > { %309 = vst.msk [vmem:[#allocation2 + $0x6] ss:$8 sm:$0x7] %vm2294_vm0, %v306_v9  ;;  %v2432_v9 = vperm.slane %v573_v53, 1 }
  0x7e   : > { %v354_v55 = vpop.permute.xlu2 %353 }
  0x85   : > { %v276_v12 = vpop.permute.xlu1 %275  ;;  %v258_v13 = vpop.permute.xlu0 %257 }
  0x86   : > { %v277_v14 = vrot.slane %v276_v12, 1  ;;  %v259_v15 = vrot.slane %v258_v13, 1 }
  0x88   : > { %v279_v16 = vsel %vm278_vm3, %v276_v12, %v277_v14  ;;  %v261_v17 = vsel %vm260_vm4, %v258_v13, %v259_v15 }
  0x89   : > { %282 = vst.msk [vmem:[#allocation2 + $0x3] ss:$8 sm:$0x7] %vm2294_vm0, %v279_v16 }
  0x8a   : > { %264 = vst.msk [vmem:[#allocation2 + $0x1] ss:$8 sm:$0x7] %vm2294_vm0, %v261_v17 }
  0x8d   : > { %v285_v19 = vpop.permute.xlu1 %284  ;;  %v267_v20 = vpop.permute.xlu0 %266 }
  0x8e   : > { %v286_v21 = vrot.slane %v285_v19, 1  ;;  %v268_v22 = vrot.slane %v267_v20, 1 }
  0x90   : > { %v288_v24 = vsel %vm287_vm5, %v285_v19, %v286_v21  ;;  %v270_v25 = vsel %vm269_vm6, %v267_v20, %v268_v22 }
  0x91   : > { %291 = vst.msk [vmem:[#allocation2 + $0x4] ss:$8 sm:$0x7] %vm2294_vm0, %v288_v24 }
  0x92   : > { %273 = vst.msk [vmem:[#allocation2 + $0x2] ss:$8 sm:$0x7] %vm2294_vm0, %v270_v25 }
  0x95   : > { %v321_v26 = vpop.permute.xlu1 %320  ;;  %v312_v27 = vpop.permute.xlu0 %311 }
  0x96   : > { %v322_v28 = vrot.slane %v321_v26, 1  ;;  %v313_v29 = vrot.slane %v312_v27, 1 }
  0x98   : > { %v324_v30 = vsel %vm323_vm7, %v321_v26, %v322_v28  ;;  %v315_v31 = vsel %vm314_vm8, %v312_v27, %v313_v29 }
  0x99   : > { %327 = vst.msk [vmem:[#allocation2 + $0x18] ss:$8 sm:$0x7] %vm2294_vm0, %v324_v30  ;;  %v369_v30 = vpop.permute.xlu2 %368 }
  0x9a   : > { %318 = vst.msk [vmem:[#allocation2 + $0x7] ss:$8 sm:$0x7] %vm2294_vm0, %v315_v31 }
  0x9d   : > { %v2408_v51 = vpop.permute.xlu1 %363  ;;  %v359_v10 = vpop.permute.xlu0 %358 }
  0xa0   : > { %v340_v33 = vld [vmem:[#allocation2 + $0x18] sm:$0x1]  ;;  %v342_v34 = vld [vmem:[#allocation2 + $0x28] sm:$0x1]  ;;  %v341_v39 = vld [vmem:[#allocation2 + $0x20] sm:$0x1] }
  0xa1   : > { %2161 = vmatpush.msk.msra.mxu0 %vm416_vm9, %v340_v33  ;;  %2193 = vmatpush.msk.msra.mxu1 %vm416_vm9, %v340_v33  ;;  %v337_v36 = vld [vmem:[#allocation2] sm:$0xff]  ;;  %v339_v38 = vld [vmem:[#allocation2 + $0x10] sm:$0xff]  ;;  %v338_v41 = vld [vmem:[#allocation2 + $0x8] sm:$0xff] }
  0xa2   : > { %2179 = vmatpush.msk.msra.mxu2 %vm416_vm9, %v342_v34 }
  0xa3   : > { %441 = vmatpush.msra.mxu0 %v337_v36  ;;  %2194 = vmatpush.msra.mxu1 %v337_v36 }
  0xa4   : > { %523 = vmatpush.msra.mxu2 %v339_v38  ;;  %2162 = vmatmul.msk.f32.vlgmr.msra.gmra.mxu0 %vm391_vm10, %v329_v35 }
  0xa5   : > { %2169 = vmatmul.msk.f32.vlgmr.msra.gmra.mxu1 %vm391_vm10, %v336_v37  ;;  %2180 = vmatmul.msk.f32.vlgmr.msra.gmra.mxu2 %vm391_vm10, %v329_v35  ;;  %v2410_v52 = vpop.permute.xlu1 %373 }
  0xa6   : > { %2170 = vmatpush.msk.msrb.mxu1 %vm416_vm9, %v341_v39 }
  0xa8   : > { %482 = vmatpush.msrb.mxu1 %v338_v41 }
  0xac   : > { %2163 = vmatmul.msk.f32.gmra.mxu0 %vm391_vm10, %v330_v42 }
  0xad   : > { %2171 = vmatmul.msk.f32.vlgmr.msrb.gmra.mxu1 %vm391_vm10, %v329_v35  ;;  %2181 = vmatmul.msk.f32.gmra.mxu2 %vm391_vm10, %v330_v42  ;;  %v2415_v54 = vpop.permute.xlu1 %388 }
  0xb4   : > { %2164 = vmatmul.msk.f32.gmra.mxu0 %vm391_vm10, %v331_v44 }
  0xb5   : > { %2172 = vmatmul.msk.f32.gmra.mxu1 %vm391_vm10, %v330_v42  ;;  %2182 = vmatmul.msk.f32.gmra.mxu2 %vm391_vm10, %v331_v44 }
  0xbc   : > { %2165 = vmatmul.msk.f32.gmra.mxu0 %vm391_vm10, %v332_v46 }
  0xbd   : > { %2173 = vmatmul.msk.f32.gmra.mxu1 %vm391_vm10, %v331_v44  ;;  %2183 = vmatmul.msk.f32.gmra.mxu2 %vm391_vm10, %v332_v46 }
  0xc4   : > { %2166 = vmatmul.msk.f32.gmra.mxu0 %vm391_vm10, %v333_v48 }
  0xc5   : > { %2174 = vmatmul.msk.f32.gmra.mxu1 %vm391_vm10, %v332_v46  ;;  %2184 = vmatmul.msk.f32.gmra.mxu2 %vm391_vm10, %v333_v48 }
  0xcc   : > { %2167 = vmatmul.msk.f32.gmra.mxu0 %vm391_vm10, %v334_v49 }
  0xcd   : > { %2175 = vmatmul.msk.f32.gmra.mxu1 %vm391_vm10, %v333_v48  ;;  %2185 = vmatmul.msk.f32.gmra.mxu2 %vm391_vm10, %v334_v49 }
  0xd4   : > { %2168 = vmatmul.msk.f32.gmra.mxu0 %vm391_vm10, %v335_v50 }
  0xd5   : > { %2176 = vmatmul.msk.f32.gmra.mxu1 %vm391_vm10, %v334_v49  ;;  %2186 = vmatmul.msk.f32.gmra.mxu2 %vm391_vm10, %v335_v50 }
  0xdd   : > { %2177 = vmatmul.msk.f32.gmra.mxu1 %vm391_vm10, %v335_v50  ;;  %2187 = vmatmul.msk.f32.gmra.mxu2 %vm391_vm10, %v336_v37 }
  0xe5   : > { %2178 = vmatmul.msk.f32.gmra.mxu1 %vm391_vm10, %v336_v37 }
 0x121   : > { %v443_v56 = vpop.f32.mrf.mxu0 }
 0x122   : > { %v444_v57 = vadd.f32 %v443_v56, %v354_v55  ;;  %v464_v59 = vpop.f32.mrf.mxu1 }
 0x123   : > { %v465_v60 = vadd.f32 %v464_v59, %v2415_v54 }
 0x124   : > { %v549_v61 = vmax.f32 %v444_v57, 0.0  ;;  %v379_v57 = vpop.permute.xlu2 %378 }
 0x125   : > { %v570_v62 = vmax.f32 %v465_v60, 0.0 }
 0x126   : > { %v2421_v63 = vmul.f32 %v2417_v58, %v549_v61 }
 0x127   : > { %v2424_v0 = vmul.f32 %v2417_v58, %v570_v62 }
 0x128   : > { %605 = vst [vmem:[#allocation3] sm:$0xff] %v2421_v63  ;;  %v525_v2 = vpop.f32.mrf.mxu2  ;;  %654 = vrot.lane.b32.xlu2 %v2421_v63, %s2233_s29 }
 0x129   : > { %627 = vst [vmem:[#allocation3 + $0xa8] sm:$0xff] %v2424_v0  ;;  %v526_v3 = vadd.f32 %v525_v2, %v354_v55  ;;  %v446_v5 = vpop.f32.mrf.mxu0 }
 0x12a   : > { %v484_v6 = vpop.f32.mrf.mxu1  ;;  %v447_v13 = vadd.f32 %v446_v5, %v359_v10 }
 0x12b   : > { %v551_v7 = vmax.f32 %v526_v3, 0.0  ;;  %v485_v8 = vadd.f32 %v484_v6, %v354_v55 }
 0x12c   : > { %v552_v15 = vmax.f32 %v447_v13, 0.0 }
 0x12d   : > { %v2435_v11 = vmul.f32 %v2430_v4, %v551_v7  ;;  %v550_v12 = vmax.f32 %v485_v8, 0.0 }
 0x12e   : > { %v2450_v19 = vmul.f32 %v2417_v58, %v552_v15 }
 0x12f   : > { %3464 = vst [vmem:[#allocation5_spill] sm:$0xff] %v2435_v11  ;;  %v2438_v14 = vmul.f32 %v2432_v9, %v550_v12  ;;  %658 = vrot.lane.b32.xlu1 %v2435_v11, %s2233_s29  ;;  %v384_v12 = vpop.permute.xlu0 %383 }
 0x130   : > { %608 = vst.msk [vmem:[#allocation3 + $0x10] sm:$0xff] %vm607_vm11, %v2435_v11  ;;  %v528_v16 = vpop.f32.mrf.mxu2  ;;  %696 = vrot.lane.b32.xlu2 %v2424_v0, %s2233_s29 }
 0x131   : > { %606 = vst [vmem:[#allocation3 + $0x8] sm:$0xff] %v2438_v14  ;;  %656 = vrot.lane.b32.xlu0 %v2438_v14, %s2233_s29  ;;  %v449_v17 = vpop.f32.mrf.mxu0  ;;  %v529_v18 = vadd.f32 %v528_v16, %v359_v10 }
 0x132   : > { %v450_v20 = vadd.f32 %v449_v17, %v2408_v51  ;;  %v487_v21 = vpop.f32.mrf.mxu1  ;;  %609 = vst [vmem:[#allocation3 + $0x18] sm:$0xff] %v2450_v19 }
 0x133   : > { %v488_v22 = vadd.f32 %v487_v21, %v359_v10  ;;  %v554_v23 = vmax.f32 %v529_v18, 0.0 }
 0x134   : > { %v555_v24 = vmax.f32 %v450_v20, 0.0 }
 0x135   : > { %v553_v25 = vmax.f32 %v488_v22, 0.0  ;;  %v2455_v26 = vmul.f32 %v2430_v4, %v554_v23 }
 0x136   : > { %v2458_v27 = vmul.f32 %v2417_v58, %v555_v24 }
 0x137   : > { %3465 = vst [vmem:[#allocation6_spill] sm:$0xff] %v2455_v26  ;;  %770 = vrot.lane.b32.xlu1 %v2435_v11, %s2236_s8  ;;  %v2463_v28 = vmul.f32 %v2432_v9, %v553_v25 }
 0x138   : > { %611 = vst.msk [vmem:[#allocation3 + $0x28] sm:$0xff] %vm607_vm11, %v2455_v26  ;;  %v531_v29 = vpop.f32.mrf.mxu2  ;;  %766 = vrot.lane.b32.xlu2 %v2421_v63, %s2236_s8 }
 0x139   : > { %612 = vst [vmem:[#allocation3 + $0x30] sm:$0xff] %v2458_v27  ;;  %v532_v31 = vadd.f32 %v531_v29, %v2408_v51  ;;  %768 = vrot.lane.b32.xlu0 %v2438_v14, %s2236_s8  ;;  %v452_v32 = vpop.f32.mrf.mxu0 }
 0x13a   : > { %610 = vst [vmem:[#allocation3 + $0x20] sm:$0xff] %v2463_v28  ;;  %v453_v33 = vadd.f32 %v452_v32, %v369_v30  ;;  %v490_v34 = vpop.f32.mrf.mxu1 }
 0x13b   : > { %v557_v35 = vmax.f32 %v532_v31, 0.0  ;;  %v491_v36 = vadd.f32 %v490_v34, %v2408_v51 }
 0x13c   : > { %v558_v37 = vmax.f32 %v453_v33, 0.0 }
 0x13d   : > { %v2476_v38 = vmul.f32 %v2430_v4, %v557_v35  ;;  %v556_v39 = vmax.f32 %v491_v36, 0.0 }
 0x13e   : > { %v2479_v40 = vmul.f32 %v2417_v58, %v558_v37 }
 0x13f   : > { %3466 = vst [vmem:[#allocation7_spill] sm:$0xff] %v2476_v38  ;;  %v2482_v41 = vmul.f32 %v2432_v9, %v556_v39  ;;  %882 = vrot.lane.b32.xlu1 %v2435_v11, %s2232_s28 }
 0x140   : > { %614 = vst.msk [vmem:[#allocation3 + $0x40] sm:$0xff] %vm607_vm11, %v2476_v38  ;;  %v534_v42 = vpop.f32.mrf.mxu2  ;;  %808 = vrot.lane.b32.xlu2 %v2424_v0, %s2236_s8 }
 0x141   : > { %615 = vst [vmem:[#allocation3 + $0x48] sm:$0xff] %v2479_v40  ;;  %v535_v43 = vadd.f32 %v534_v42, %v369_v30  ;;  %880 = vrot.lane.b32.xlu0 %v2438_v14, %s2232_s28  ;;  %v455_v44 = vpop.f32.mrf.mxu0 }
 0x142   : > { %613 = vst [vmem:[#allocation3 + $0x38] sm:$0xff] %v2482_v41  ;;  %v456_v45 = vadd.f32 %v455_v44, %v2410_v52  ;;  %v493_v46 = vpop.f32.mrf.mxu1 }
 0x143   : > { %v560_v47 = vmax.f32 %v535_v43, 0.0  ;;  %v494_v48 = vadd.f32 %v493_v46, %v369_v30 }
 0x144   : > { %v561_v49 = vmax.f32 %v456_v45, 0.0 }
 0x145   : > { %v2496_v50 = vmul.f32 %v2430_v4, %v560_v47  ;;  %v559_v51 = vmax.f32 %v494_v48, 0.0 }
 0x146   : > { %v2499_v53 = vmul.f32 %v2417_v58, %v561_v49 }
 0x147   : > { %v2502_v55 = vmul.f32 %v2432_v9, %v559_v51  ;;  %994 = vrot.lane.b32.xlu1 %v2435_v11, %s2235_s7  ;;  %617 = vst.msk [vmem:[#allocation3 + $0x58] sm:$0xff] %vm607_vm11, %v2496_v50 }
 0x148   : > { %618 = vst [vmem:[#allocation3 + $0x60] sm:$0xff] %v2499_v53  ;;  %v537_v56 = vpop.f32.mrf.mxu2  ;;  %878 = vrot.lane.b32.xlu2 %v2421_v63, %s2232_s28 }
 0x149   : > { %616 = vst [vmem:[#allocation3 + $0x50] sm:$0xff] %v2502_v55  ;;  %v538_v59 = vadd.f32 %v537_v56, %v2410_v52  ;;  %992 = vrot.lane.b32.xlu0 %v2438_v14, %s2235_s7  ;;  %v458_v60 = vpop.f32.mrf.mxu0 }
 0x14a   : > { %v459_v61 = vadd.f32 %v458_v60, %v379_v57  ;;  %v496_v62 = vpop.f32.mrf.mxu1 }
 0x14b   : > { %v563_v2 = vmax.f32 %v538_v59, 0.0  ;;  %v497_v3 = vadd.f32 %v496_v62, %v2410_v52 }
 0x14c   : > { %v564_v5 = vmax.f32 %v459_v61, 0.0 }
 0x14d   : > { %v2517_v6 = vmul.f32 %v2430_v4, %v563_v2  ;;  %v562_v7 = vmax.f32 %v497_v3, 0.0 }
 0x14e   : > { %v2520_v8 = vmul.f32 %v2417_v58, %v564_v5 }
 0x14f   : > { %v2523_v10 = vmul.f32 %v2432_v9, %v562_v7  ;;  %1106 = vrot.lane.b32.xlu1 %v2435_v11, %s2234_s30  ;;  %620 = vst.msk [vmem:[#allocation3 + $0x70] sm:$0xff] %vm607_vm11, %v2517_v6 }
 0x150   : > { %v540_v13 = vpop.f32.mrf.mxu2  ;;  %920 = vrot.lane.b32.xlu2 %v2424_v0, %s2232_s28 }
 0x151   : > { %619 = vst [vmem:[#allocation3 + $0x68] sm:$0xff] %v2523_v10  ;;  %v541_v52 = vadd.f32 %v540_v13, %v379_v57  ;;  %1104 = vrot.lane.b32.xlu0 %v2438_v14, %s2234_s30  ;;  %v461_v15 = vpop.f32.mrf.mxu0 }
 0x152   : > { %v462_v16 = vadd.f32 %v461_v15, %v384_v12  ;;  %v499_v17 = vpop.f32.mrf.mxu1 }
 0x153   : > { %v566_v18 = vmax.f32 %v541_v52, 0.0  ;;  %v500_v20 = vadd.f32 %v499_v17, %v379_v57 }
 0x154   : > { %v567_v21 = vmax.f32 %v462_v16, 0.0 }
 0x155   : > { %v2535_v22 = vmul.f32 %v2430_v4, %v566_v18  ;;  %v565_v23 = vmax.f32 %v500_v20, 0.0 }
 0x156   : > { %v2538_v24 = vmul.f32 %v2417_v58, %v567_v21 }
 0x157   : > { %v2541_v25 = vmul.f32 %v2432_v9, %v565_v23  ;;  %664 = vrot.lane.b32.xlu1 %v2455_v26, %s2233_s29  ;;  %623 = vst.msk [vmem:[#allocation3 + $0x88] sm:$0xff] %vm607_vm11, %v2535_v22 }
 0x158   : > { %v543_v29 = vpop.f32.mrf.mxu2  ;;  %990 = vrot.lane.b32.xlu2 %v2421_v63, %s2235_s7 }
 0x159   : > { %622 = vst [vmem:[#allocation3 + $0x80] sm:$0xff] %v2541_v25  ;;  %v544_v30 = vadd.f32 %v543_v29, %v384_v12  ;;  %662 = vrot.lane.b32.xlu0 %v2463_v28, %s2233_s29 }
 0x15a   : > { %v502_v58 = vpop.f32.mrf.mxu1 }
 0x15b   : > { %v569_v31 = vmax.f32 %v544_v30, 0.0  ;;  %v503_v32 = vadd.f32 %v502_v58, %v384_v12 }
 0x15d   : > { %v2553_v33 = vmul.f32 %v2430_v4, %v569_v31  ;;  %v568_v34 = vmax.f32 %v503_v32, 0.0 }
 0x15f   : > { %v2556_v35 = vmul.f32 %v2432_v9, %v568_v34  ;;  %776 = vrot.lane.b32.xlu1 %v2455_v26, %s2236_s8  ;;  %626 = vst.msk [vmem:[#allocation3 + $0xa0] sm:$0xff] %vm607_vm11, %v2553_v33 }
 0x160   : > { %v546_v36 = vpop.f32.mrf.mxu2  ;;  %1032 = vrot.lane.b32.xlu2 %v2424_v0, %s2235_s7 }
 0x161   : > { %625 = vst [vmem:[#allocation3 + $0x98] sm:$0xff] %v2556_v35  ;;  %v547_v37 = vadd.f32 %v546_v36, %v2415_v54  ;;  %774 = vrot.lane.b32.xlu0 %v2463_v28, %s2236_s8 }
 0x162   : > { %v505_v39 = vpop.f32.mrf.mxu1 }
 0x163   : > { %v572_v42 = vmax.f32 %v547_v37, 0.0  ;;  %v506_v43 = vadd.f32 %v505_v39, %v2415_v54 }
 0x165   : > { %v2570_v44 = vmul.f32 %v2430_v4, %v572_v42  ;;  %v571_v45 = vmax.f32 %v506_v43, 0.0 }
 0x167   : > { %v2573_v46 = vmul.f32 %v2432_v9, %v571_v45  ;;  %888 = vrot.lane.b32.xlu1 %v2455_v26, %s2232_s28  ;;  %629 = vst.msk [vmem:[#allocation3 + $0xb8] sm:$0xff] %vm607_vm11, %v2570_v44 }
 0x168   : > { %1102 = vrot.lane.b32.xlu2 %v2421_v63, %s2234_s30 }
 0x169   : > { %628 = vst [vmem:[#allocation3 + $0xb0] sm:$0xff] %v2573_v46  ;;  %886 = vrot.lane.b32.xlu0 %v2463_v28, %s2232_s28 }
 0x16f   : > { %1000 = vrot.lane.b32.xlu1 %v2455_v26, %s2235_s7 }
 0x170   : > { %660 = vrot.lane.b32.xlu2 %v2450_v19, %s2233_s29 }
 0x171   : > { %998 = vrot.lane.b32.xlu0 %v2463_v28, %s2235_s7 }
 0x177   : > { %1112 = vrot.lane.b32.xlu1 %v2455_v26, %s2234_s30 }
 0x178   : > { %772 = vrot.lane.b32.xlu2 %v2450_v19, %s2236_s8 }
 0x179   : > { %1110 = vrot.lane.b32.xlu0 %v2463_v28, %s2234_s30 }
 0x17f   : > { %670 = vrot.lane.b32.xlu1 %v2476_v38, %s2233_s29 }
 0x180   : > { %884 = vrot.lane.b32.xlu2 %v2450_v19, %s2232_s28 }
 0x181   : > { %668 = vrot.lane.b32.xlu0 %v2482_v41, %s2233_s29 }
 0x182   : > { %v655_v54 = vpop.permute.xlu2 %654 }
 0x187   : > { %782 = vrot.lane.b32.xlu1 %v2476_v38, %s2236_s8 }
 0x188   : > { %996 = vrot.lane.b32.xlu2 %v2450_v19, %s2235_s7 }
 0x189   : > { %780 = vrot.lane.b32.xlu0 %v2482_v41, %s2236_s8 }
 0x18a   : > { %v2608_v4 = vpop.permute.xlu2 %696 }
 0x18f   : > { %894 = vrot.lane.b32.xlu1 %v2476_v38, %s2232_s28 }
 0x190   : > { %1108 = vrot.lane.b32.xlu2 %v2450_v19, %s2234_s30 }
 0x191   : > { %892 = vrot.lane.b32.xlu0 %v2482_v41, %s2232_s28 }
 0x192   : > { %v767_v9 = vpop.permute.xlu2 %766 }
 0x197   : > { %1006 = vrot.lane.b32.xlu1 %v2476_v38, %s2235_s7 }
 0x198   : > { %666 = vrot.lane.b32.xlu2 %v2458_v27, %s2233_s29 }
 0x199   : > { %1004 = vrot.lane.b32.xlu0 %v2482_v41, %s2235_s7 }
 0x19a   : > { %v2622_v47 = vpop.permute.xlu2 %808 }
 0x19f   : > { %1118 = vrot.lane.b32.xlu1 %v2476_v38, %s2234_s30 }
 0x1a0   : > { %778 = vrot.lane.b32.xlu2 %v2458_v27, %s2236_s8 }
 0x1a1   : > { %v659_v48 = vpop.permute.xlu1 %658  ;;  %1116 = vrot.lane.b32.xlu0 %v2482_v41, %s2234_s30 }
 0x1a2   : > { %744 = vst.msk [vmem:[#allocation3 + $0xd0] sm:$0xff] %vm607_vm11, %v659_v48  ;;  %v879_v49 = vpop.permute.xlu2 %878 }
 0x1a3   : > { %v657_v51 = vpop.permute.xlu0 %656 }
 0x1a4   : > { %v2632_v56 = vsel %vm260_vm4, %v655_v54, %v657_v51  ;;  %v703_v57 = vsel %vm260_vm4, %v657_v51, %v659_v48 }
 0x1a5   : > { %743 = vst [vmem:[#allocation3 + $0xc8] sm:$0xff] %v703_v57 }
 0x1a7   : > { %676 = vrot.lane.b32.xlu1 %v2496_v50, %s2233_s29 }
 0x1a8   : > { %890 = vrot.lane.b32.xlu2 %v2458_v27, %s2232_s28 }
 0x1a9   : > { %v771_v59 = vpop.permute.xlu1 %770  ;;  %674 = vrot.lane.b32.xlu0 %v2502_v55, %s2233_s29 }
 0x1aa   : > { %856 = vst.msk [vmem:[#allocation3 + $0x190] sm:$0xff] %vm607_vm11, %v771_v59  ;;  %v2642_v60 = vpop.permute.xlu2 %920 }
 0x1ab   : > { %v769_v61 = vpop.permute.xlu0 %768 }
 0x1ac   : > { %v814_v62 = vsel %vm269_vm6, %v767_v9, %v769_v61  ;;  %v815_v2 = vsel %vm269_vm6, %v769_v61, %v771_v59 }
 0x1ad   : > { %854 = vst [vmem:[#allocation3 + $0x180] sm:$0xff] %v814_v62 }
 0x1ae   : > { %855 = vst [vmem:[#allocation3 + $0x188] sm:$0xff] %v815_v2 }
 0x1af   : > { %788 = vrot.lane.b32.xlu1 %v2496_v50, %s2236_s8 }
 0x1b0   : > { %1002 = vrot.lane.b32.xlu2 %v2458_v27, %s2235_s7 }
 0x1b1   : > { %v883_v3 = vpop.permute.xlu1 %882  ;;  %786 = vrot.lane.b32.xlu0 %v2502_v55, %s2236_s8 }
 0x1b2   : > { %968 = vst.msk [vmem:[#allocation3 + $0x250] sm:$0xff] %vm607_vm11, %v883_v3  ;;  %v991_v5 = vpop.permute.xlu2 %990 }
 0x1b3   : > { %v881_v7 = vpop.permute.xlu0 %880 }
 0x1b4   : > { %v2654_v12 = vsel %vm278_vm3, %v879_v49, %v881_v7  ;;  %v927_v13 = vsel %vm278_vm3, %v881_v7, %v883_v3 }
 0x1b5   : > { %967 = vst [vmem:[#allocation3 + $0x248] sm:$0xff] %v927_v13 }
 0x1b7   : > { %900 = vrot.lane.b32.xlu1 %v2496_v50, %s2232_s28 }
 0x1b8   : > { %1114 = vrot.lane.b32.xlu2 %v2458_v27, %s2234_s30 }
 0x1b9   : > { %v995_v52 = vpop.permute.xlu1 %994  ;;  %898 = vrot.lane.b32.xlu0 %v2502_v55, %s2232_s28 }
 0x1ba   : > { %1080 = vst.msk [vmem:[#allocation3 + $0x310] sm:$0xff] %vm607_vm11, %v995_v52  ;;  %v2664_v15 = vpop.permute.xlu2 %1032 }
 0x1bb   : > { %v993_v16 = vpop.permute.xlu0 %992 }
 0x1bc   : > { %v1038_v17 = vsel %vm287_vm5, %v991_v5, %v993_v16  ;;  %v1039_v18 = vsel %vm287_vm5, %v993_v16, %v995_v52 }
 0x1bd   : > { %1078 = vst [vmem:[#allocation3 + $0x300] sm:$0xff] %v1038_v17 }
 0x1be   : > { %1079 = vst [vmem:[#allocation3 + $0x308] sm:$0xff] %v1039_v18 }
 0x1bf   : > { %1012 = vrot.lane.b32.xlu1 %v2496_v50, %s2235_s7 }
 0x1c0   : > { %672 = vrot.lane.b32.xlu2 %v2479_v40, %s2233_s29 }
 0x1c1   : > { %v1107_v20 = vpop.permute.xlu1 %1106  ;;  %1010 = vrot.lane.b32.xlu0 %v2502_v55, %s2235_s7 }
 0x1c2   : > { %1192 = vst.msk [vmem:[#allocation3 + $0x3d0] sm:$0xff] %vm607_vm11, %v1107_v20  ;;  %v1103_v21 = vpop.permute.xlu2 %1102 }
 0x1c3   : > { %v1105_v23 = vpop.permute.xlu0 %1104 }
 0x1c4   : > { %v1151_v29 = vsel %vm296_vm1, %v1105_v23, %v1107_v20  ;;  %v2677_v30 = vsel %vm296_vm1, %v1103_v21, %v1105_v23 }
 0x1c5   : > { %1191 = vst [vmem:[#allocation3 + $0x3c8] sm:$0xff] %v1151_v29 }
 0x1c7   : > { %682 = vrot.lane.b32.xlu1 %v2517_v6, %s2233_s29 }
 0x1c8   : > { %784 = vrot.lane.b32.xlu2 %v2479_v40, %s2236_s8 }
 0x1c9   : > { %v665_v58 = vpop.permute.xlu1 %664  ;;  %680 = vrot.lane.b32.xlu0 %v2523_v10, %s2233_s29 }
 0x1ca   : > { %747 = vst.msk [vmem:[#allocation3 + $0xe8] sm:$0xff] %vm607_vm11, %v665_v58  ;;  %v661_v31 = vpop.permute.xlu2 %660 }
 0x1cb   : > { %v663_v32 = vpop.permute.xlu0 %662 }
 0x1cc   : > { %v705_v34 = vsel %vm260_vm4, %v663_v32, %v665_v58  ;;  %v2688_v36 = vsel %vm260_vm4, %v661_v31, %v663_v32 }
 0x1cd   : > { %746 = vst [vmem:[#allocation3 + $0xe0] sm:$0xff] %v705_v34 }
 0x1cf   : > { %794 = vrot.lane.b32.xlu1 %v2517_v6, %s2236_s8 }
 0x1d0   : > { %896 = vrot.lane.b32.xlu2 %v2479_v40, %s2232_s28 }
 0x1d1   : > { %v777_v37 = vpop.permute.xlu1 %776  ;;  %792 = vrot.lane.b32.xlu0 %v2523_v10, %s2236_s8 }
 0x1d2   : > { %859 = vst.msk [vmem:[#allocation3 + $0x1a8] sm:$0xff] %vm607_vm11, %v777_v37  ;;  %v773_v39 = vpop.permute.xlu2 %772 }
 0x1d3   : > { %v775_v42 = vpop.permute.xlu0 %774 }
 0x1d4   : > { %v817_v43 = vsel %vm269_vm6, %v775_v42, %v777_v37  ;;  %v2699_v45 = vsel %vm269_vm6, %v773_v39, %v775_v42 }
 0x1d5   : > { %858 = vst [vmem:[#allocation3 + $0x1a0] sm:$0xff] %v817_v43 }
 0x1d7   : > { %906 = vrot.lane.b32.xlu1 %v2517_v6, %s2232_s28 }
 0x1d8   : > { %1008 = vrot.lane.b32.xlu2 %v2479_v40, %s2235_s7 }
 0x1d9   : > { %v889_v54 = vpop.permute.xlu1 %888  ;;  %904 = vrot.lane.b32.xlu0 %v2523_v10, %s2232_s28 }
 0x1da   : > { %971 = vst.msk [vmem:[#allocation3 + $0x268] sm:$0xff] %vm607_vm11, %v889_v54  ;;  %v885_v9 = vpop.permute.xlu2 %884 }
 0x1db   : > { %v887_v48 = vpop.permute.xlu0 %886 }
 0x1dc   : > { %v929_v49 = vsel %vm278_vm3, %v887_v48, %v889_v54  ;;  %v2710_v51 = vsel %vm278_vm3, %v885_v9, %v887_v48 }
 0x1dd   : > { %970 = vst [vmem:[#allocation3 + $0x260] sm:$0xff] %v929_v49 }
 0x1df   : > { %1018 = vrot.lane.b32.xlu1 %v2517_v6, %s2235_s7 }
 0x1e0   : > { %678 = vrot.lane.b32.xlu2 %v2499_v53, %s2233_s29 }
 0x1e1   : > { %v1001_v57 = vpop.permute.xlu1 %1000  ;;  %1016 = vrot.lane.b32.xlu0 %v2523_v10, %s2235_s7 }
 0x1e2   : > { %1083 = vst.msk [vmem:[#allocation3 + $0x328] sm:$0xff] %vm607_vm11, %v1001_v57  ;;  %v997_v59 = vpop.permute.xlu2 %996 }
 0x1e3   : > { %v999_v61 = vpop.permute.xlu0 %998 }
 0x1e4   : > { %v1041_v62 = vsel %vm287_vm5, %v999_v61, %v1001_v57  ;;  %v2721_v2 = vsel %vm287_vm5, %v997_v59, %v999_v61 }
 0x1e5   : > { %1082 = vst [vmem:[#allocation3 + $0x320] sm:$0xff] %v1041_v62 }
 0x1e7   : > { %688 = vrot.lane.b32.xlu1 %v2535_v22, %s2233_s29 }
 0x1e8   : > { %790 = vrot.lane.b32.xlu2 %v2499_v53, %s2236_s8 }
 0x1e9   : > { %v1113_v3 = vpop.permute.xlu1 %1112  ;;  %686 = vrot.lane.b32.xlu0 %v2541_v25, %s2233_s29 }
 0x1ea   : > { %1195 = vst.msk [vmem:[#allocation3 + $0x3e8] sm:$0xff] %vm607_vm11, %v1113_v3  ;;  %v1109_v5 = vpop.permute.xlu2 %1108 }
 0x1eb   : > { %v1111_v7 = vpop.permute.xlu0 %1110 }
 0x1ec   : > { %v1153_v13 = vsel %vm296_vm1, %v1111_v7, %v1113_v3  ;;  %v2732_v52 = vsel %vm296_vm1, %v1109_v5, %v1111_v7 }
 0x1ed   : > { %1194 = vst [vmem:[#allocation3 + $0x3e0] sm:$0xff] %v1153_v13 }
 0x1ef   : > { %800 = vrot.lane.b32.xlu1 %v2535_v22, %s2236_s8 }
 0x1f0   : > { %902 = vrot.lane.b32.xlu2 %v2499_v53, %s2232_s28 }
 0x1f1   : > { %v671_v16 = vpop.permute.xlu1 %670  ;;  %798 = vrot.lane.b32.xlu0 %v2541_v25, %s2236_s8 }
 0x1f2   : > { %750 = vst.msk [vmem:[#allocation3 + $0x100] sm:$0xff] %vm607_vm11, %v671_v16  ;;  %v667_v17 = vpop.permute.xlu2 %666 }
 0x1f3   : > { %v669_v18 = vpop.permute.xlu0 %668 }
 0x1f4   : > { %v2742_v20 = vsel %vm260_vm4, %v669_v18, %v671_v16  ;;  %v2745_v21 = vsel %vm260_vm4, %v667_v17, %v669_v18 }
 0x1f7   : > { %912 = vrot.lane.b32.xlu1 %v2535_v22, %s2232_s28 }
 0x1f8   : > { %1014 = vrot.lane.b32.xlu2 %v2499_v53, %s2235_s7 }
 0x1f9   : > { %v783_v23 = vpop.permute.xlu1 %782  ;;  %910 = vrot.lane.b32.xlu0 %v2541_v25, %s2232_s28 }
 0x1fa   : > { %862 = vst.msk [vmem:[#allocation3 + $0x1c0] sm:$0xff] %vm607_vm11, %v783_v23  ;;  %v779_v29 = vpop.permute.xlu2 %778 }
 0x1fb   : > { %v781_v58 = vpop.permute.xlu0 %780 }
 0x1fc   : > { %v819_v31 = vsel %vm269_vm6, %v781_v58, %v783_v23  ;;  %v2756_v32 = vsel %vm269_vm6, %v779_v29, %v781_v58 }
 0x1fd   : > { %861 = vst [vmem:[#allocation3 + $0x1b8] sm:$0xff] %v819_v31 }
 0x1ff   : > { %1024 = vrot.lane.b32.xlu1 %v2535_v22, %s2235_s7 }
 0x200   : > { %684 = vrot.lane.b32.xlu2 %v2520_v8, %s2233_s29 }
 0x201   : > { %v895_v34 = vpop.permute.xlu1 %894  ;;  %1022 = vrot.lane.b32.xlu0 %v2541_v25, %s2235_s7 }
 0x202   : > { %974 = vst.msk [vmem:[#allocation3 + $0x280] sm:$0xff] %vm607_vm11, %v895_v34  ;;  %v891_v37 = vpop.permute.xlu2 %890 }
 0x203   : > { %v893_v39 = vpop.permute.xlu0 %892 }
 0x204   : > { %v2766_v42 = vsel %vm278_vm3, %v893_v39, %v895_v34  ;;  %v2769_v43 = vsel %vm278_vm3, %v891_v37, %v893_v39 }
 0x205   : > { %3467 = vst [vmem:[#allocation8_spill] sm:$0xff] %v2766_v42 }
 0x207   : > { %1124 = vrot.lane.b32.xlu1 %v2496_v50, %s2234_s30 }
 0x208   : > { %796 = vrot.lane.b32.xlu2 %v2520_v8, %s2236_s8 }
 0x209   : > { %v1007_v54 = vpop.permute.xlu1 %1006  ;;  %1122 = vrot.lane.b32.xlu0 %v2502_v55, %s2234_s30 }
 0x20a   : > { %1086 = vst.msk [vmem:[#allocation3 + $0x340] sm:$0xff] %vm607_vm11, %v1007_v54  ;;  %v1003_v9 = vpop.permute.xlu2 %1002 }
 0x20b   : > { %v1005_v48 = vpop.permute.xlu0 %1004 }
 0x20c   : > { %v1043_v49 = vsel %vm287_vm5, %v1005_v48, %v1007_v54  ;;  %v2780_v57 = vsel %vm287_vm5, %v1003_v9, %v1005_v48 }
 0x20d   : > { %1085 = vst [vmem:[#allocation3 + $0x338] sm:$0xff] %v1043_v49 }
 0x20f   : > { %694 = vrot.lane.b32.xlu1 %v2553_v33, %s2233_s29 }
 0x210   : > { %908 = vrot.lane.b32.xlu2 %v2520_v8, %s2232_s28 }
 0x211   : > { %v1119_v59 = vpop.permute.xlu1 %1118  ;;  %692 = vrot.lane.b32.xlu0 %v2556_v35, %s2233_s29 }
 0x212   : > { %1198 = vst.msk [vmem:[#allocation3 + $0x400] sm:$0xff] %vm607_vm11, %v1119_v59  ;;  %v1115_v61 = vpop.permute.xlu2 %1114 }
 0x213   : > { %v1117_v62 = vpop.permute.xlu0 %1116 }
 0x214   : > { %v1155_v3 = vsel %vm296_vm1, %v1117_v62, %v1119_v59  ;;  %v2791_v5 = vsel %vm296_vm1, %v1115_v61, %v1117_v62 }
 0x215   : > { %1197 = vst [vmem:[#allocation3 + $0x3f8] sm:$0xff] %v1155_v3 }
 0x217   : > { %806 = vrot.lane.b32.xlu1 %v2553_v33, %s2236_s8 }
 0x218   : > { %1020 = vrot.lane.b32.xlu2 %v2520_v8, %s2235_s7 }
 0x219   : > { %v677_v7 = vpop.permute.xlu1 %676  ;;  %804 = vrot.lane.b32.xlu0 %v2556_v35, %s2236_s8 }
 0x21a   : > { %753 = vst.msk [vmem:[#allocation3 + $0x118] sm:$0xff] %vm607_vm11, %v677_v7  ;;  %v673_v13 = vpop.permute.xlu2 %672 }
 0x21b   : > { %v675_v16 = vpop.permute.xlu0 %674 }
 0x21c   : > { %v2801_v17 = vsel %vm260_vm4, %v675_v16, %v677_v7  ;;  %v2804_v18 = vsel %vm260_vm4, %v673_v13, %v675_v16 }
 0x21f   : > { %918 = vrot.lane.b32.xlu1 %v2553_v33, %s2232_s28 }
 0x220   : > { %690 = vrot.lane.b32.xlu2 %v2538_v24, %s2233_s29 }
 0x221   : > { %v789_v23 = vpop.permute.xlu1 %788  ;;  %916 = vrot.lane.b32.xlu0 %v2556_v35, %s2232_s28 }
 0x222   : > { %865 = vst.msk [vmem:[#allocation3 + $0x1d8] sm:$0xff] %vm607_vm11, %v789_v23  ;;  %v785_v29 = vpop.permute.xlu2 %784 }
 0x223   : > { %v787_v58 = vpop.permute.xlu0 %786 }
 0x224   : > { %v2814_v31 = vsel %vm269_vm6, %v787_v58, %v789_v23  ;;  %v2817_v34 = vsel %vm269_vm6, %v785_v29, %v787_v58 }
 0x225   : > { %3468 = vst [vmem:[#allocation9_spill] sm:$0xff] %v2814_v31 }
 0x227   : > { %1030 = vrot.lane.b32.xlu1 %v2553_v33, %s2235_s7 }
 0x228   : > { %802 = vrot.lane.b32.xlu2 %v2538_v24, %s2236_s8 }
 0x229   : > { %v901_v37 = vpop.permute.xlu1 %900  ;;  %1028 = vrot.lane.b32.xlu0 %v2556_v35, %s2235_s7 }
 0x22a   : > { %977 = vst.msk [vmem:[#allocation3 + $0x298] sm:$0xff] %vm607_vm11, %v901_v37  ;;  %v897_v39 = vpop.permute.xlu2 %896 }
 0x22b   : > { %v899_v54 = vpop.permute.xlu0 %898 }
 0x22c   : > { %v2827_v9 = vsel %vm278_vm3, %v899_v54, %v901_v37  ;;  %v2830_v48 = vsel %vm278_vm3, %v897_v39, %v899_v54 }
 0x22d   : > { %3469 = vst [vmem:[#allocation10_spill] sm:$0xff] %v2827_v9 }
 0x22f   : > { %700 = vrot.lane.b32.xlu1 %v2570_v44, %s2233_s29 }
 0x230   : > { %914 = vrot.lane.b32.xlu2 %v2538_v24, %s2232_s28 }
 0x231   : > { %v1013_v49 = vpop.permute.xlu1 %1012  ;;  %698 = vrot.lane.b32.xlu0 %v2573_v46, %s2233_s29 }
 0x232   : > { %1089 = vst.msk [vmem:[#allocation3 + $0x358] sm:$0xff] %vm607_vm11, %v1013_v49  ;;  %v1009_v59 = vpop.permute.xlu2 %1008 }
 0x233   : > { %v1011_v61 = vpop.permute.xlu0 %1010 }
 0x234   : > { %v1045_v62 = vsel %vm287_vm5, %v1011_v61, %v1013_v49  ;;  %v2841_v3 = vsel %vm287_vm5, %v1009_v59, %v1011_v61 }
 0x235   : > { %1088 = vst [vmem:[#allocation3 + $0x350] sm:$0xff] %v1045_v62 }
 0x237   : > { %812 = vrot.lane.b32.xlu1 %v2570_v44, %s2236_s8 }
 0x238   : > { %1026 = vrot.lane.b32.xlu2 %v2538_v24, %s2235_s7 }
 0x239   : > { %v683_v7 = vpop.permute.xlu1 %682  ;;  %810 = vrot.lane.b32.xlu0 %v2573_v46, %s2236_s8 }
 0x23a   : > { %756 = vst.msk [vmem:[#allocation3 + $0x130] sm:$0xff] %vm607_vm11, %v683_v7  ;;  %v679_v13 = vpop.permute.xlu2 %678 }
 0x23b   : > { %v681_v16 = vpop.permute.xlu0 %680 }
 0x23c   : > { %v2851_v23 = vsel %vm260_vm4, %v681_v16, %v683_v7  ;;  %v2854_v29 = vsel %vm260_vm4, %v679_v13, %v681_v16 }
 0x23f   : > { %924 = vrot.lane.b32.xlu1 %v2570_v44, %s2232_s28 }
 0x240   : > { %1120 = vrot.lane.b32.xlu2 %v2479_v40, %s2234_s30 }
 0x241   : > { %v795_v58 = vpop.permute.xlu1 %794  ;;  %922 = vrot.lane.b32.xlu0 %v2573_v46, %s2232_s28 }
 0x242   : > { %868 = vst.msk [vmem:[#allocation3 + $0x1f0] sm:$0xff] %vm607_vm11, %v795_v58  ;;  %v791_v37 = vpop.permute.xlu2 %790 }
 0x243   : > { %v793_v39 = vpop.permute.xlu0 %792 }
 0x244   : > { %v2864_v54 = vsel %vm269_vm6, %v793_v39, %v795_v58  ;;  %v2867_v49 = vsel %vm269_vm6, %v791_v37, %v793_v39 }
 0x245   : > { %3470 = vst [vmem:[#allocation11_spill] sm:$0xff] %v2864_v54 }
 0x247   : > { %1036 = vrot.lane.b32.xlu1 %v2570_v44, %s2235_s7 }
 0x248   : > { %1126 = vrot.lane.b32.xlu2 %v2499_v53, %s2234_s30 }
 0x249   : > { %v907_v59 = vpop.permute.xlu1 %906  ;;  %1034 = vrot.lane.b32.xlu0 %v2573_v46, %s2235_s7 }
 0x24a   : > { %980 = vst.msk [vmem:[#allocation3 + $0x2b0] sm:$0xff] %vm607_vm11, %v907_v59  ;;  %v903_v61 = vpop.permute.xlu2 %902 }
 0x24b   : > { %v905_v62 = vpop.permute.xlu0 %904 }
 0x24c   : > { %v2877_v7 = vsel %vm278_vm3, %v905_v62, %v907_v59  ;;  %v2880_v13 = vsel %vm278_vm3, %v903_v61, %v905_v62 }
 0x24f   : > { %1144 = vrot.lane.b32.xlu1 %v2424_v0, %s2234_s30 }
 0x250   : > { %1146 = vrot.lane.b32.xlu2 %v2573_v46, %s2234_s30 }
 0x251   : > { %v1019_v16 = vpop.permute.xlu1 %1018  ;;  %1128 = vrot.lane.b32.xlu0 %v2523_v10, %s2234_s30 }
 0x252   : > { %1092 = vst.msk [vmem:[#allocation3 + $0x370] sm:$0xff] %vm607_vm11, %v1019_v16  ;;  %v1015_v58 = vpop.permute.xlu2 %1014 }
 0x253   : > { %v1017_v37 = vpop.permute.xlu0 %1016 }
 0x254   : > { %v1047_v39 = vsel %vm287_vm5, %v1017_v37, %v1019_v16  ;;  %v2891_v59 = vsel %vm287_vm5, %v1015_v58, %v1017_v37 }
 0x255   : > { %1091 = vst [vmem:[#allocation3 + $0x368] sm:$0xff] %v1047_v39 }
 0x257   : > { %1140 = vrot.lane.b32.xlu1 %v2556_v35, %s2234_s30 }
 0x258   : > { %1368 = vrot.lane.b32.xlu2 %v2424_v0, %s2239_s11 }
 0x259   : > { %v689_v61 = vpop.permute.xlu1 %688  ;;  %1138 = vrot.lane.b32.xlu0 %v2538_v24, %s2234_s30 }
 0x25a   : > { %759 = vst.msk [vmem:[#allocation3 + $0x148] sm:$0xff] %vm607_vm11, %v689_v61  ;;  %v685_v62 = vpop.permute.xlu2 %684 }
 0x25b   : > { %v687_v1 = vpop.permute.xlu0 %686 }
 0x25c   : > { %v2901_v16 = vsel %vm260_vm4, %v687_v1, %v689_v61  ;;  %v2904_v58 = vsel %vm260_vm4, %v685_v62, %v687_v1 }
 0x25f   : > { %1132 = vrot.lane.b32.xlu1 %v2520_v8, %s2234_s30 }
 0x260   : > { %1134 = vrot.lane.b32.xlu2 %v2541_v25, %s2234_s30 }
 0x261   : > { %v801_v37 = vpop.permute.xlu1 %800  ;;  %1370 = vrot.lane.b32.xlu0 %v2573_v46, %s2239_s11 }
 0x262   : > { %871 = vst.msk [vmem:[#allocation3 + $0x208] sm:$0xff] %vm607_vm11, %v801_v37  ;;  %v797_v39 = vpop.permute.xlu2 %796 }
 0x263   : > { %v799_v31 = vpop.permute.xlu0 %798 }
 0x264   : > { %v2914_v61 = vsel %vm269_vm6, %v799_v31, %v801_v37  ;;  %v2917_v1 = vsel %vm269_vm6, %v797_v39, %v799_v31 }
 0x265   : > { %3471 = vst [vmem:[#allocation12_spill] sm:$0xff] %v2914_v61 }
 0x267   : > { %1364 = vrot.lane.b32.xlu1 %v2556_v35, %s2239_s11 }
 0x268   : > { %1356 = vrot.lane.b32.xlu2 %v2520_v8, %s2239_s11 }
 0x269   : > { %v913_v62 = vpop.permute.xlu1 %912  ;;  %1362 = vrot.lane.b32.xlu0 %v2538_v24, %s2239_s11 }
 0x26a   : > { %983 = vst.msk [vmem:[#allocation3 + $0x2c8] sm:$0xff] %vm607_vm11, %v913_v62  ;;  %v909_v54 = vpop.permute.xlu2 %908 }
 0x26b   : > { %v911_v11 = vpop.permute.xlu0 %910 }
 0x26c   : > { %v2927_v37 = vsel %vm278_vm3, %v911_v11, %v913_v62  ;;  %v2930_v31 = vsel %vm278_vm3, %v909_v54, %v911_v11 }
 0x26f   : > { %1350 = vrot.lane.b32.xlu1 %v2499_v53, %s2239_s11 }
 0x270   : > { %1352 = vrot.lane.b32.xlu2 %v2523_v10, %s2239_s11 }
 0x271   : > { %v1025_v39 = vpop.permute.xlu1 %1024  ;;  %1358 = vrot.lane.b32.xlu0 %v2541_v25, %s2239_s11 }
 0x272   : > { %1095 = vst.msk [vmem:[#allocation3 + $0x388] sm:$0xff] %vm607_vm11, %v1025_v39  ;;  %v1021_v61 = vpop.permute.xlu2 %1020 }
 0x273   : > { %v1023_v42 = vpop.permute.xlu0 %1022 }
 0x274   : > { %v1049_v62 = vsel %vm287_vm5, %v1023_v42, %v1025_v39  ;;  %v2941_v9 = vsel %vm287_vm5, %v1021_v61, %v1023_v42 }
 0x275   : > { %1094 = vst [vmem:[#allocation3 + $0x380] sm:$0xff] %v1049_v62 }
 0x277   : > { %1346 = vrot.lane.b32.xlu1 %v2502_v55, %s2239_s11 }
 0x278   : > { %1338 = vrot.lane.b32.xlu2 %v2458_v27, %s2239_s11 }
 0x279   : > { %v1125_v11 = vpop.permute.xlu1 %1124  ;;  %1344 = vrot.lane.b32.xlu0 %v2479_v40, %s2239_s11 }
 0x27a   : > { %1201 = vst.msk [vmem:[#allocation3 + $0x418] sm:$0xff] %vm607_vm11, %v1125_v11  ;;  %v691_v54 = vpop.permute.xlu2 %690 }
 0x27b   : > { %v1123_v26 = vpop.permute.xlu0 %1122 }
 0x27c   : > { %v1157_v39 = vsel %vm296_vm1, %v1123_v26, %v1125_v11 }
 0x27d   : > { %1200 = vst [vmem:[#allocation3 + $0x410] sm:$0xff] %v1157_v39 }
 0x27f   : > { %1332 = vrot.lane.b32.xlu1 %v2450_v19, %s2239_s11 }
 0x280   : > { %1334 = vrot.lane.b32.xlu2 %v2463_v28, %s2239_s11 }
 0x281   : > { %v695_v42 = vpop.permute.xlu1 %694  ;;  %1340 = vrot.lane.b32.xlu0 %v2482_v41, %s2239_s11 }
 0x282   : > { %762 = vst.msk [vmem:[#allocation3 + $0x160] sm:$0xff] %vm607_vm11, %v695_v42  ;;  %v803_v27 = vpop.permute.xlu2 %802 }
 0x283   : > { %v693_v61 = vpop.permute.xlu0 %692 }
 0x284   : > { %v714_v62 = vsel %vm260_vm4, %v691_v54, %v693_v61  ;;  %v2960_v38 = vsel %vm260_vm4, %v693_v61, %v695_v42 }
 0x287   : > { %1482 = vrot.lane.b32.xlu1 %v2573_v46, %s2238_s10 }
 0x288   : > { %1326 = vrot.lane.b32.xlu2 %v2421_v63, %s2239_s11 }
 0x289   : > { %v807_v19 = vpop.permute.xlu1 %806  ;;  %1480 = vrot.lane.b32.xlu0 %v2424_v0, %s2238_s10 }
 0x28a   : > { %874 = vst.msk [vmem:[#allocation3 + $0x220] sm:$0xff] %vm607_vm11, %v807_v19  ;;  %v915_v28 = vpop.permute.xlu2 %914 }
 0x28b   : > { %v805_v41 = vpop.permute.xlu0 %804 }
 0x28c   : > { %v2970_v11 = vsel %vm269_vm6, %v803_v27, %v805_v41  ;;  %v2973_v54 = vsel %vm269_vm6, %v805_v41, %v807_v19 }
 0x28f   : > { %1474 = vrot.lane.b32.xlu1 %v2538_v24, %s2238_s10 }
 0x290   : > { %1476 = vrot.lane.b32.xlu2 %v2556_v35, %s2238_s10 }
 0x291   : > { %v919_v63 = vpop.permute.xlu1 %918  ;;  %1328 = vrot.lane.b32.xlu0 %v2438_v14, %s2239_s11 }
 0x292   : > { %986 = vst.msk [vmem:[#allocation3 + $0x2e0] sm:$0xff] %vm607_vm11, %v919_v63  ;;  %v1027_v39 = vpop.permute.xlu2 %1026 }
 0x293   : > { %v917_v42 = vpop.permute.xlu0 %916 }
 0x294   : > { %v2983_v27 = vsel %vm278_vm3, %v915_v28, %v917_v42  ;;  %v2986_v61 = vsel %vm278_vm3, %v917_v42, %v919_v63 }
 0x297   : > { %1258 = vrot.lane.b32.xlu1 %v2573_v46, %s2237_s9 }
 0x298   : > { %1468 = vrot.lane.b32.xlu2 %v2520_v8, %s2238_s10 }
 0x299   : > { %v1031_v19 = vpop.permute.xlu1 %1030  ;;  %1256 = vrot.lane.b32.xlu0 %v2424_v0, %s2237_s9 }
 0x29a   : > { %1098 = vst.msk [vmem:[#allocation3 + $0x3a0] sm:$0xff] %vm607_vm11, %v1031_v19  ;;  %v1121_v14 = vpop.permute.xlu2 %1120 }
 0x29b   : > { %v1029_v41 = vpop.permute.xlu0 %1028  ;;  %v2996_v28 = vsel %vm296_vm1, %v1121_v14, %v1123_v26 }
 0x29c   : > { %v2999_v63 = vsel %vm287_vm5, %v1027_v39, %v1029_v41  ;;  %v1051_v42 = vsel %vm287_vm5, %v1029_v41, %v1031_v19 }
 0x29d   : > { %1097 = vst [vmem:[#allocation3 + $0x398] sm:$0xff] %v1051_v42  ;;  %v1557_v42 = vld [vmem:[#allocation3 + $0x30] sm:$0xff] }
 0x29f   : > { %1250 = vrot.lane.b32.xlu1 %v2538_v24, %s2237_s9 }
 0x2a0   : > { %1252 = vrot.lane.b32.xlu2 %v2556_v35, %s2237_s9 }
 0x2a1   : > { %v701_v0 = vpop.permute.xlu1 %700  ;;  %1470 = vrot.lane.b32.xlu0 %v2541_v25, %s2238_s10 }
 0x2a2   : > { %765 = vst.msk [vmem:[#allocation3 + $0x178] sm:$0xff] %vm607_vm11, %v701_v0  ;;  %v3009_v26 = vpop.permute.xlu2 %1126 }
 0x2a3   : > { %v699_v46 = vpop.permute.xlu0 %698 }
 0x2a4   : > { %v716_v39 = vsel %vm260_vm4, %v2608_v4, %v699_v46  ;;  %v3014_v19 = vsel %vm260_vm4, %v699_v46, %v701_v0  ;;  %v1554_v0 = vld [vmem:[#allocation3 + $0x18] sm:$0xff] }
 0x2a5   : > { %1787 = vmatpush.msra.mxu3 %v716_v39 }
 0x2a7   : > { %1464 = vrot.lane.b32.xlu1 %v2523_v10, %s2238_s10  ;;  %1788 = vmatpush.msra.mxu3 %v714_v62 }
 0x2a8   : > { %1244 = vrot.lane.b32.xlu2 %v2520_v8, %s2237_s9 }
 0x2a9   : > { %v813_v35 = vpop.permute.xlu1 %812  ;;  %1462 = vrot.lane.b32.xlu0 %v2499_v53, %s2238_s10  ;;  %1789 = vmatpush.msra.mxu3 %v2904_v58 }
 0x2aa   : > { %877 = vst.msk [vmem:[#allocation3 + $0x238] sm:$0xff] %vm607_vm11, %v813_v35  ;;  %v3024_v4 = vpop.permute.xlu2 %1146 }
 0x2ab   : > { %v811_v14 = vpop.permute.xlu0 %810  ;;  %1790 = vmatpush.msra.mxu3 %v2854_v29 }
 0x2ac   : > { %v3029_v41 = vsel %vm269_vm6, %v2622_v47, %v811_v14  ;;  %v3032_v62 = vsel %vm269_vm6, %v811_v14, %v813_v35  ;;  %v1551_v14 = vld [vmem:[#allocation3] sm:$0xff] }
 0x2ad   : > { %1791 = vmatpush.msra.mxu3 %v2804_v18 }
 0x2af   : > { %1372 = vrot.lane.b32.xlu1 %v2570_v44, %s2239_s11  ;;  %1792 = vmatpush.msra.mxu3 %v2745_v21 }
 0x2b0   : > { %1456 = vrot.lane.b32.xlu2 %v2479_v40, %s2238_s10  ;;  %v1572_v40 = vld [vmem:[#allocation3 + $0xa8] sm:$0xff] }
 0x2b1   : > { %v925_v58 = vpop.permute.xlu1 %924  ;;  %1246 = vrot.lane.b32.xlu0 %v2541_v25, %s2237_s9  ;;  %1793 = vmatpush.msra.mxu3 %v2688_v36 }
 0x2b2   : > { %989 = vst.msk [vmem:[#allocation3 + $0x2f8] sm:$0xff] %vm607_vm11, %v925_v58  ;;  %v3044_v47 = vpop.permute.xlu2 %1368 }
 0x2b3   : > { %v923_v29 = vpop.permute.xlu0 %922  ;;  %1794 = vmatpush.msra.mxu3 %v2632_v56 }
 0x2b4   : > { %v940_v18 = vsel %vm278_vm3, %v2642_v60, %v923_v29  ;;  %v3050_v21 = vsel %vm278_vm3, %v923_v29, %v925_v58  ;;  %v1563_v60 = vld [vmem:[#allocation3 + $0x60] sm:$0xff] }
 0x2b5   : > { %1795 = vmatpush.msra.mxu3 %v1572_v40 }
 0x2b7   : > { %1238 = vrot.lane.b32.xlu1 %v2499_v53, %s2237_s9  ;;  %1796 = vmatpush.msra.mxu3 %v2538_v24 }
 0x2b8   : > { %1240 = vrot.lane.b32.xlu2 %v2523_v10, %s2237_s9  ;;  %v1560_v10 = vld [vmem:[#allocation3 + $0x48] sm:$0xff] }
 0x2b9   : > { %v1037_v25 = vpop.permute.xlu1 %1036  ;;  %1458 = vrot.lane.b32.xlu0 %v2502_v55, %s2238_s10  ;;  %1797 = vmatpush.msra.mxu3 %v2520_v8  ;;  %v2216_v55 = vld [vmem:[#allocation3 + $0x30] sm:$0xff]  ;;  %v2217_v8 = vld [vmem:[#allocation3 + $0x38] sm:$0xff] }
 0x2ba   : > { %1101 = vst.msk [vmem:[#allocation3 + $0x3b8] sm:$0xff] %vm607_vm11, %v1037_v25  ;;  %v3061_v56 = vpop.permute.xlu2 %1134 }
 0x2bb   : > { %v1035_v36 = vpop.permute.xlu0 %1034  ;;  %1798 = vmatpush.msra.mxu3 %v1563_v60  ;;  %v2219_v60 = vld [vmem:[#allocation3 + $0x50] sm:$0xff] }
 0x2bc   : > { %v3065_v53 = vsel %vm287_vm5, %v2664_v15, %v1035_v36  ;;  %v1053_v24 = vsel %vm287_vm5, %v1035_v36, %v1037_v25  ;;  %v3075_v15 = vld [vmem:[%s3451_s3] sm:$0x1f]  ;;  %v2218_v25 = vld [vmem:[#allocation3 + $0x48] sm:$0xff] }
 0x2bd   : > { %1799 = vmatpush.msra.mxu3 %v1560_v10  ;;  %1100 = vst [vmem:[#allocation3 + $0x3b0] sm:$0xff] %v1053_v24  ;;  %v3082_v58 = vperm.slane %v3075_v15, 0 }
 0x2bf   : > { %1450 = vrot.lane.b32.xlu1 %v2216_v55, %s2238_s10  ;;  %1800 = vmatpush.msra.mxu3 %v1557_v42 }
 0x2c0   : > { %1452 = vrot.lane.b32.xlu2 %v2217_v8, %s2238_s10 }
 0x2c1   : > { %v1145_v46 = vpop.permute.xlu1 %1144  ;;  %1366 = vrot.lane.b32.xlu0 %v2553_v33, %s2239_s11  ;;  %1801 = vmatpush.msra.mxu3 %v1554_v0 }
 0x2c2   : > { %v1164_v39 = vsel %vm296_vm1, %v1145_v46, %v3024_v4  ;;  %v3079_v35 = vpop.permute.xlu2 %1356 }
 0x2c3   : > { %v3084_v29 = vpop.permute.xlu0 %1128  ;;  %1827 = vmatpush.msrb.mxu0 %v1164_v39  ;;  %1802 = vmatpush.msra.mxu3 %v1551_v14  ;;  %v1627_v14 = vld [vmem:[#allocation3 + $0x260] sm:$0xff] }
 0x2c4   : > { %v1158_v40 = vsel %vm296_vm1, %v3009_v26, %v3084_v29  ;;  %1803 = vmatmul.f32.vlgmr.msra.gmra.mxu3 %v3082_v58 }
 0x2c5   : > { %1807 = vmatpush.msrb.mxu3 %v940_v18  ;;  %v2220_v18 = vld [vmem:[#allocation3 + $0x18] sm:$0xff] }
 0x2c7   : > { %1808 = vmatpush.msrb.mxu3 %v2983_v27  ;;  %1232 = vrot.lane.b32.xlu1 %v2218_v25, %s2237_s9  ;;  %v1561_v25 = vld [vmem:[#allocation3 + $0x50] sm:$0xff] }
 0x2c8   : > { %1234 = vrot.lane.b32.xlu2 %v2219_v60, %s2237_s9  ;;  %v1624_v60 = vld [vmem:[#allocation3 + $0x248] sm:$0xff] }
 0x2c9   : > { %1809 = vmatpush.msrb.mxu3 %v2930_v31  ;;  %v3094_v36 = vpop.permute.xlu1 %1140  ;;  %1148 = vrot.lane.b32.xlu0 %v2570_v44, %s2234_s30  ;;  %v2221_v31 = vld [vmem:[#allocation3 + $0x20] sm:$0xff] }
 0x2ca   : > { %v3098_v24 = vpop.permute.xlu2 %1352 }
 0x2cb   : > { %1810 = vmatpush.msrb.mxu3 %v2880_v13  ;;  %v1139_v26 = vpop.permute.xlu0 %1138 }
 0x2cc   : > { %v1162_v27 = vsel %vm296_vm1, %v1139_v26, %v3094_v36  ;;  %v1558_v26 = vld [vmem:[#allocation3 + $0x38] sm:$0xff] }
 0x2cd   : > { %1811 = vmatpush.msrb.mxu3 %v2830_v48  ;;  %1828 = vmatpush.msrb.mxu0 %v1162_v27  ;;  %v3476_v27 = vld [vmem:[#allocation5_spill] sm:$0xff] }
 0x2cf   : > { %1812 = vmatpush.msrb.mxu3 %v2769_v43  ;;  %1444 = vrot.lane.b32.xlu1 %v2220_v18, %s2238_s10 }
 0x2d0   : > { %1446 = vrot.lane.b32.xlu2 %v2221_v31, %s2238_s10 }
 0x2d1   : > { %1813 = vmatpush.msrb.mxu3 %v2710_v51  ;;  %v1133_v10 = vpop.permute.xlu1 %1132  ;;  %1360 = vrot.lane.b32.xlu0 %v2535_v22, %s2239_s11 }
 0x2d2   : > { %v1160_v13 = vsel %vm296_vm1, %v1133_v10, %v3061_v56  ;;  %v3112_v42 = vpop.permute.xlu2 %1338 }
 0x2d3   : > { %1814 = vmatpush.msrb.mxu3 %v2654_v12  ;;  %v3115_v43 = vpop.permute.xlu0 %1370  ;;  %1829 = vmatpush.msrb.mxu0 %v1160_v13 }
 0x2d4   : > { %v1388_v48 = vsel %vm314_vm8, %v3044_v47, %v3115_v43 }
 0x2d5   : > { %1815 = vmatpush.msrb.mxu3 %v3029_v41  ;;  %1830 = vmatpush.msrb.mxu0 %v1158_v40 }
 0x2d6   : > { %1847 = vmatpush.msra.mxu1 %v1388_v48  ;;  %v1552_v48 = vld [vmem:[#allocation3 + $0x8] sm:$0xff] }
 0x2d7   : > { %1816 = vmatpush.msrb.mxu3 %v2970_v11  ;;  %1226 = vrot.lane.b32.xlu1 %v2216_v55, %s2237_s9  ;;  %v3473_v55 = vld [vmem:[#allocation6_spill] sm:$0xff] }
 0x2d8   : > { %1831 = vmatpush.msrb.mxu0 %v2996_v28  ;;  %1228 = vrot.lane.b32.xlu2 %v2217_v8, %s2237_s9  ;;  %v3474_v8 = vld [vmem:[#allocation10_spill] sm:$0xff] }
 0x2d9   : > { %1817 = vmatpush.msrb.mxu3 %v2917_v1  ;;  %v3126_v12 = vpop.permute.xlu1 %1364  ;;  %1142 = vrot.lane.b32.xlu0 %v2553_v33, %s2234_s30  ;;  %v2222_v1 = vld [vmem:[#allocation3] sm:$0xff] }
 0x2da   : > { %1832 = vmatpush.msrb.mxu0 %v2791_v5  ;;  %v3131_v51 = vpop.permute.xlu2 %1334  ;;  %v2223_v5 = vld [vmem:[#allocation3 + $0x8] sm:$0xff] }
 0x2db   : > { %1818 = vmatpush.msrb.mxu3 %v2867_v49  ;;  %v1363_v11 = vpop.permute.xlu0 %1362 }
 0x2dc   : > { %1833 = vmatpush.msrb.mxu0 %v2732_v52  ;;  %v1386_v28 = vsel %vm314_vm8, %v1363_v11, %v3126_v12  ;;  %v3145_v52 = vperm.slane %v3075_v15, 1 }
 0x2dd   : > { %1819 = vmatpush.msrb.mxu3 %v2817_v34  ;;  %1848 = vmatpush.msra.mxu1 %v1386_v28  ;;  %v3478_v28 = vld [vmem:[#allocation11_spill] sm:$0xff] }
 0x2de   : > { %1834 = vmatpush.msrb.mxu0 %v2677_v30  ;;  %v1599_v30 = vld [vmem:[#allocation3 + $0x180] sm:$0xff] }
 0x2df   : > { %1820 = vmatpush.msrb.mxu3 %v2756_v32  ;;  %1438 = vrot.lane.b32.xlu1 %v2222_v1, %s2238_s10 }
 0x2e0   : > { %1835 = vmatpush.msrb.mxu0 %v3065_v53  ;;  %1440 = vrot.lane.b32.xlu2 %v2223_v5, %s2238_s10  ;;  %v1570_v53 = vld [vmem:[#allocation3 + $0x98] sm:$0xff] }
 0x2e1   : > { %1821 = vmatpush.msrb.mxu3 %v2699_v45  ;;  %v1351_v49 = vpop.permute.xlu1 %1350  ;;  %1354 = vrot.lane.b32.xlu0 %v2517_v6, %s2239_s11 }
 0x2e2   : > { %1836 = vmatpush.msrb.mxu0 %v2999_v63  ;;  %v1382_v32 = vsel %vm314_vm8, %v1351_v49, %v3098_v24  ;;  %v3152_v34 = vpop.permute.xlu2 %1326  ;;  %v1606_v49 = vld [vmem:[#allocation3 + $0x1b8] sm:$0xff] }
 0x2e3   : > { %1822 = vmatpush.msrb.mxu3 %v1599_v30  ;;  %v3154_v41 = vpop.permute.xlu0 %1358 }
 0x2e4   : > { %1837 = vmatpush.msrb.mxu0 %v2941_v9  ;;  %v1384_v45 = vsel %vm314_vm8, %v3079_v35, %v3154_v41  ;;  %1823 = vmatmul.f32.vlgmr.msrb.gmra.mxu3 %v3145_v52  ;;  %v1564_v35 = vld [vmem:[#allocation3 + $0x68] sm:$0xff] }
 0x2e5   : > { %1887 = vmatpush.msra.mxu3 %v3014_v19  ;;  %1849 = vmatpush.msra.mxu1 %v1384_v45  ;;  %v1600_v45 = vld [vmem:[#allocation3 + $0x188] sm:$0xff] }
 0x2e6   : > { %1838 = vmatpush.msrb.mxu0 %v2891_v59 }
 0x2e7   : > { %1888 = vmatpush.msra.mxu3 %v2960_v38  ;;  %1220 = vrot.lane.b32.xlu1 %v2220_v18, %s2237_s9 }
 0x2e8   : > { %1839 = vmatpush.msrb.mxu0 %v2841_v3  ;;  %1222 = vrot.lane.b32.xlu2 %v2221_v31, %s2237_s9  ;;  %v1647_v3 = vld [vmem:[#allocation3 + $0x300] sm:$0xff] }
 0x2e9   : > { %1850 = vmatpush.msra.mxu1 %v1382_v32  ;;  %v3167_v9 = vpop.permute.xlu1 %1346  ;;  %1136 = vrot.lane.b32.xlu0 %v2535_v22, %s2234_s30  ;;  %v1555_v31 = vld [vmem:[#allocation3 + $0x20] sm:$0xff] }
 0x2ea   : > { %1889 = vmatpush.msra.mxu3 %v2901_v16  ;;  %v3172_v63 = vpop.permute.xlu2 %1476  ;;  %1840 = vmatpush.msrb.mxu0 %v2780_v57  ;;  %v3184_v57 = vperm.slane %v3075_v15, 2 }
 0x2eb   : > { %v1345_v59 = vpop.permute.xlu0 %1344 }
 0x2ec   : > { %1890 = vmatpush.msra.mxu3 %v2851_v23  ;;  %v1380_v38 = vsel %vm314_vm8, %v1345_v59, %v3167_v9  ;;  %1841 = vmatpush.msrb.mxu0 %v2721_v2  ;;  %v1579_v23 = vld [vmem:[#allocation3 + $0xe0] sm:$0xff] }
 0x2ed   : > { %1851 = vmatpush.msra.mxu1 %v1380_v38 }
 0x2ee   : > { %1891 = vmatpush.msra.mxu3 %v2801_v17  ;;  %1842 = vmatpush.msrb.mxu0 %v1647_v3  ;;  %v1595_v3 = vld [vmem:[#allocation3 + $0x160] sm:$0xff] }
 0x2ef   : > { %1130 = vrot.lane.b32.xlu1 %v2517_v6, %s2234_s30  ;;  %1843 = vmatmul.f32.vlgmr.msrb.gmra.mxu0 %v3184_v57  ;;  %s2195_s30 = smul.u32 3, %s3482_s24 }
 0x2f0   : > { %1892 = vmatpush.msra.mxu3 %v2742_v20  ;;  %1214 = vrot.lane.b32.xlu2 %v2222_v1, %s2237_s9  ;;  %v1576_v20 = vld [vmem:[#allocation3 + $0xc8] sm:$0xff] }
 0x2f1   : > { %1907 = vmatpush.msra.mxu0 %v3050_v21  ;;  %1348 = vrot.lane.b32.xlu0 %v2496_v50, %s2239_s11  ;;  %v1333_v2 = vpop.permute.xlu1 %1332  ;;  %v1573_v21 = vld [vmem:[#allocation3 + $0xb0] sm:$0xff]  ;;  %v3479_v1 = vld [vmem:[#allocation9_spill] sm:$0xff] }
 0x2f2   : > { %1893 = vmatpush.msra.mxu3 %v1579_v23  ;;  %v1376_v17 = vsel %vm314_vm8, %v1333_v2, %v3131_v51  ;;  %v3192_v16 = vpop.permute.xlu2 %1468  ;;  %v1592_v2 = vld [vmem:[#allocation3 + $0x148] sm:$0xff] }
 0x2f3   : > { %1908 = vmatpush.msra.mxu0 %v2986_v61  ;;  %v3195_v19 = vpop.permute.xlu0 %1340  ;;  %v3472_v61 = vld [vmem:[#allocation7_spill] sm:$0xff] }
 0x2f4   : > { %1894 = vmatpush.msra.mxu3 %v1576_v20  ;;  %v1378_v47 = vsel %vm314_vm8, %v3112_v42, %v3195_v19  ;;  %v1586_v20 = vld [vmem:[#allocation3 + $0x118] sm:$0xff] }
 0x2f5   : > { %1909 = vmatpush.msra.mxu0 %v2927_v37  ;;  %1852 = vmatpush.msra.mxu1 %v1378_v47  ;;  %v1567_v37 = vld [vmem:[#allocation3 + $0x80] sm:$0xff] }
 0x2f6   : > { %1895 = vmatpush.msra.mxu3 %v1573_v21 }
 0x2f7   : > { %1910 = vmatpush.msra.mxu0 %v2877_v7  ;;  %1342 = vrot.lane.b32.xlu1 %v3472_v61, %s2239_s11  ;;  %v3475_v7 = vld [vmem:[#allocation8_spill] sm:$0xff] }
 0x2f8   : > { %1896 = vmatpush.msra.mxu3 %v1570_v53  ;;  %1336 = vrot.lane.b32.xlu2 %v3473_v55, %s2239_s11 }
 0x2f9   : > { %1911 = vmatpush.msra.mxu0 %v3474_v8  ;;  %1216 = vrot.lane.b32.xlu0 %v2223_v5, %s2237_s9  ;;  %v3209_v0 = vpop.permute.xlu1 %1482 }
 0x2fa   : > { %1853 = vmatpush.msra.mxu1 %v1376_v17  ;;  %v3211_v46 = vpop.permute.xlu2 %1252  ;;  %1897 = vmatpush.msra.mxu3 %v1567_v37  ;;  %v1589_v17 = vld [vmem:[#allocation3 + $0x130] sm:$0xff]  ;;  %v1580_v37 = vld [vmem:[#allocation3 + $0xe8] sm:$0xff] }
 0x2fb   : > { %1912 = vmatpush.msra.mxu0 %v3475_v7  ;;  %v1481_v39 = vpop.permute.xlu0 %1480  ;;  %v1577_v7 = vld [vmem:[#allocation3 + $0xd0] sm:$0xff] }
 0x2fc   : > { %v1500_v40 = vsel %vm323_vm7, %v1481_v39, %v3209_v0  ;;  %1898 = vmatpush.msra.mxu3 %v1564_v35 }
 0x2fd   : > { %1913 = vmatpush.msra.mxu0 %v1627_v14  ;;  %1875 = vmatpush.msrb.mxu2 %v1500_v40  ;;  %v1571_v14 = vld [vmem:[#allocation3 + $0xa0] sm:$0xff] }
 0x2fe   : > { %1899 = vmatpush.msra.mxu3 %v1561_v25  ;;  %v1568_v25 = vld [vmem:[#allocation3 + $0x88] sm:$0xff] }
 0x2ff   : > { %1914 = vmatpush.msra.mxu0 %v1624_v60  ;;  %1260 = vrot.lane.b32.xlu1 %v2570_v44, %s2237_s9  ;;  %v1767_v60 = vld [vmem:[#allocation4] sm:$0x1] }
 0x300   : > { %1254 = vrot.lane.b32.xlu2 %v2553_v33, %s2237_s9  ;;  %1900 = vmatpush.msra.mxu3 %v1558_v26  ;;  %v1565_v26 = vld [vmem:[#allocation3 + $0x70] sm:$0xff] }
 0x301   : > { %1330 = vrot.lane.b32.xlu0 %v3476_v27, %s2239_s11  ;;  %v1475_v18 = vpop.permute.xlu1 %1474  ;;  %1915 = vmatpush.msra.mxu0 %v3032_v62  ;;  %v3477_v62 = vld [vmem:[#allocation12_spill] sm:$0xff] }
 0x302   : > { %v1498_v10 = vsel %vm323_vm7, %v1475_v18, %v3172_v63  ;;  %v3225_v13 = vpop.permute.xlu2 %1244  ;;  %1901 = vmatpush.msra.mxu3 %v1555_v31 }
 0x303   : > { %v3227_v42 = vpop.permute.xlu0 %1328  ;;  %1916 = vmatpush.msra.mxu0 %v2973_v54  ;;  %1876 = vmatpush.msrb.mxu2 %v1498_v10 }
 0x304   : > { %v1374_v11 = vsel %vm314_vm8, %v3152_v34, %v3227_v42  ;;  %1902 = vmatpush.msra.mxu3 %v1552_v48  ;;  %v1603_v34 = vld [vmem:[#allocation3 + $0x1a0] sm:$0xff] }
 0x305   : > { %1903 = vmatmul.f32.vlgmr.msra.gmra.mxu3 %v3082_v58  ;;  %1917 = vmatpush.msra.mxu0 %v3477_v62 }
 0x306   : > { %1854 = vmatpush.msra.mxu1 %v1374_v11  ;;  %v1556_v11 = vld [vmem:[#allocation3 + $0x28] sm:$0xff] }
 0x307   : > { %1248 = vrot.lane.b32.xlu1 %v2535_v22, %s2237_s9  ;;  %1918 = vmatpush.msra.mxu0 %v3478_v28 }
 0x308   : > { %1478 = vrot.lane.b32.xlu2 %v2553_v33, %s2238_s10  ;;  %v1598_v33 = vld [vmem:[#allocation3 + $0x178] sm:$0xff] }
 0x309   : > { %1484 = vrot.lane.b32.xlu0 %v2570_v44, %s2238_s10  ;;  %v3242_v54 = vpop.permute.xlu1 %1258  ;;  %1919 = vmatpush.msra.mxu0 %v3479_v1 }
 0x30a   : > { %v3245_v5 = vpop.permute.xlu2 %1456 }
 0x30b   : > { %v1257_v30 = vpop.permute.xlu0 %1256  ;;  %1920 = vmatpush.msra.mxu0 %v1606_v49 }
 0x30c   : > { %v1276_v32 = vsel %vm305_vm2, %v1257_v30, %v3242_v54 }
 0x30d   : > { %1921 = vmatpush.msra.mxu0 %v1603_v34  ;;  %1855 = vmatpush.msra.mxu1 %v1276_v32 }
 0x30f   : > { %1472 = vrot.lane.b32.xlu1 %v2535_v22, %s2238_s10  ;;  %1922 = vmatpush.msra.mxu0 %v1600_v45 }
 0x310   : > { %1236 = vrot.lane.b32.xlu2 %v2496_v50, %s2237_s9  ;;  %1923 = vmatmul.f32.vlgmr.msra.gmra.mxu0 %v3145_v52 }
 0x311   : > { %1242 = vrot.lane.b32.xlu0 %v2517_v6, %s2237_s9  ;;  %v1251_v44 = vpop.permute.xlu1 %1250  ;;  %1987 = vmatpush.msrb.mxu0 %v1598_v33 }
 0x312   : > { %v1274_v59 = vsel %vm305_vm2, %v1251_v44, %v3211_v46  ;;  %v3258_v38 = vpop.permute.xlu2 %1240 }
 0x313   : > { %v3260_v23 = vpop.permute.xlu0 %1470  ;;  %1988 = vmatpush.msrb.mxu0 %v1595_v3  ;;  %1856 = vmatpush.msra.mxu1 %v1274_v59 }
 0x314   : > { %v1496_v22 = vsel %vm323_vm7, %v3192_v16, %v3260_v23  ;;  %v1583_v16 = vld [vmem:[#allocation3 + $0x100] sm:$0xff] }
 0x315   : > { %1989 = vmatpush.msrb.mxu0 %v1592_v2  ;;  %1877 = vmatpush.msrb.mxu2 %v1496_v22 }
 0x317   : > { %1230 = vrot.lane.b32.xlu1 %v3472_v61, %s2237_s9  ;;  %1990 = vmatpush.msrb.mxu0 %v1589_v17 }
 0x318   : > { %1460 = vrot.lane.b32.xlu2 %v2496_v50, %s2238_s10  ;;  %v1574_v50 = vld [vmem:[#allocation3 + $0xb8] sm:$0xff] }
 0x319   : > { %1466 = vrot.lane.b32.xlu0 %v2517_v6, %s2238_s10  ;;  %v3271_v47 = vpop.permute.xlu1 %1464  ;;  %1991 = vmatpush.msrb.mxu0 %v1586_v20 }
 0x31a   : > { %v3273_v21 = vpop.permute.xlu2 %1452 }
 0x31b   : > { %v1463_v53 = vpop.permute.xlu0 %1462  ;;  %1992 = vmatpush.msrb.mxu0 %v1583_v16 }
 0x31c   : > { %v1494_v8 = vsel %vm323_vm7, %v1463_v53, %v3271_v47  ;;  %v3338_v53 = vperm.slane %v3075_v15, 4 }
 0x31d   : > { %1993 = vmatpush.msrb.mxu0 %v1580_v37  ;;  %1878 = vmatpush.msrb.mxu2 %v1494_v8 }
 0x31f   : > { %1454 = vrot.lane.b32.xlu1 %v3472_v61, %s2238_s10  ;;  %1994 = vmatpush.msrb.mxu0 %v1577_v7 }
 0x320   : > { %1218 = vrot.lane.b32.xlu2 %v3476_v27, %s2237_s9 }
 0x321   : > { %1224 = vrot.lane.b32.xlu0 %v3473_v55, %s2237_s9  ;;  %v1373_v6 = vpop.permute.xlu1 %1372  ;;  %1995 = vmatpush.msrb.mxu0 %v1574_v50  ;;  %s248_s9 = scalar_lea.vmem %s3454_s6, %s2195_s30 }
 0x322   : > { %v3285_v39 = vsel %vm314_vm8, %v3115_v43, %v1373_v6  ;;  %1437 = vst.msk [vmem:[#allocation3 + $0x5f8] sm:$0xff] %vm607_vm11, %v1373_v6  ;;  %v3288_v35 = vpop.permute.xlu2 %1234  ;;  %v1562_v43 = vld [vmem:[#allocation3 + $0x58] sm:$0xff] }
 0x323   : > { %v3290_v61 = vpop.permute.xlu0 %1246  ;;  %1996 = vmatpush.msrb.mxu0 %v1571_v14 }
 0x324   : > { %v1272_v40 = vsel %vm305_vm2, %v3225_v13, %v3290_v61  ;;  %v1559_v13 = vld [vmem:[#allocation3 + $0x40] sm:$0xff] }
 0x325   : > { %1997 = vmatpush.msrb.mxu0 %v1568_v25  ;;  %1857 = vmatpush.msra.mxu1 %v1272_v40 }
 0x327   : > { %1442 = vrot.lane.b32.xlu1 %v3476_v27, %s2238_s10  ;;  %1998 = vmatpush.msrb.mxu0 %v1565_v26 }
 0x328   : > { %1770 = vperm.xlu2 %2213, %v1767_v60  }
 0x329   : > { %1448 = vrot.lane.b32.xlu0 %v3473_v55, %s2238_s10  ;;  %v1239_v18 = vpop.permute.xlu1 %1238  ;;  %1999 = vmatpush.msrb.mxu0 %v1562_v43  ;;  %v1553_v55 = vld [vmem:[#allocation3 + $0x10] sm:$0xff] }
 0x32a   : > { %v1270_v31 = vsel %vm305_vm2, %v1239_v18, %v3258_v38  ;;  %v3301_v10 = vpop.permute.xlu2 %1446 }
 0x32b   : > { %v3303_v48 = vpop.permute.xlu0 %1458  ;;  %2000 = vmatpush.msrb.mxu0 %v1559_v13  ;;  %1858 = vmatpush.msra.mxu1 %v1270_v31  ;;  %v3372_v31 = vperm.slane %v3075_v15, 3 }
 0x32c   : > { %v1492_v27 = vsel %vm323_vm7, %v3245_v5, %v3303_v48 }
 0x32d   : > { %2001 = vmatpush.msrb.mxu0 %v1556_v11  ;;  %1879 = vmatpush.msrb.mxu2 %v1492_v27 }
 0x32f   : > { %2002 = vmatpush.msrb.mxu0 %v1553_v55 }
 0x330   : > { %2003 = vmatmul.f32.vlgmr.msrb.gmra.mxu0 %v3082_v58 }
 0x331   : > { %v1451_v62 = vpop.permute.xlu1 %1450 }
 0x332   : > { %v1490_v28 = vsel %vm323_vm7, %v1451_v62, %v3273_v21  ;;  %v3311_v1 = vpop.permute.xlu2 %1228  ;;  %v1681_v62 = vld [vmem:[#allocation3 + $0x410] sm:$0xff] }
 0x333   : > { %v1367_v49 = vpop.permute.xlu0 %1366  ;;  %1880 = vmatpush.msrb.mxu2 %v1490_v28 }
 0x334   : > { %v1387_v30 = vsel %vm314_vm8, %v3126_v12, %v1367_v49  ;;  %1434 = vst.msk [vmem:[#allocation3 + $0x5e0] sm:$0xff] %vm607_vm11, %v1367_v49 }
 0x339   : > { %v1233_v5 = vpop.permute.xlu1 %1232 }
 0x33a   : > { %v1268_v32 = vsel %vm305_vm2, %v1233_v5, %v3288_v35  ;;  %v3318_v34 = vpop.permute.xlu2 %1440 }
 0x33b   : > { %v1149_v58 = vpop.permute.xlu0 %1148  ;;  %1859 = vmatpush.msra.mxu1 %v1268_v32 }
 0x33c   : > { %v3322_v45 = vsel %vm296_vm1, %v3024_v4, %v1149_v58  ;;  %1213 = vst.msk [vmem:[#allocation3 + $0x478] sm:$0xff] %vm607_vm11, %v1149_v58  ;;  %v1672_v58 = vld [vmem:[#allocation3 + $0x3c8] sm:$0xff] }
 0x341   : > { %v1445_v33 = vpop.permute.xlu1 %1444 }
 0x342   : > { %v1488_v12 = vsel %vm323_vm7, %v1445_v33, %v3301_v10  ;;  %v3327_v44 = vpop.permute.xlu2 %1222 }
 0x343   : > { %v1361_v59 = vpop.permute.xlu0 %1360  ;;  %1881 = vmatpush.msrb.mxu2 %v1488_v12 }
 0x344   : > { %v1385_v3 = vsel %vm314_vm8, %v3154_v41, %v1361_v59  ;;  %1431 = vst.msk [vmem:[#allocation3 + $0x5c8] sm:$0xff] %vm607_vm11, %v1361_v59  ;;  %v1663_v59 = vld [vmem:[#allocation3 + $0x380] sm:$0xff] }
 0x349   : > { %v1227_v22 = vpop.permute.xlu1 %1226 }
 0x34a   : > { %v1266_v4 = vsel %vm305_vm2, %v1227_v22, %v3311_v1  ;;  %v1215_v2 = vpop.permute.xlu2 %1214 }
 0x34b   : > { %v1143_v17 = vpop.permute.xlu0 %1142  ;;  %1860 = vmatpush.msra.mxu1 %v1266_v4  ;;  %v1660_v4 = vld [vmem:[#allocation3 + $0x368] sm:$0xff] }
 0x34c   : > { %v1163_v20 = vsel %vm296_vm1, %v3094_v36, %v1143_v17  ;;  %1210 = vst.msk [vmem:[#allocation3 + $0x460] sm:$0xff] %vm607_vm11, %v1143_v17  ;;  %v1657_v17 = vld [vmem:[#allocation3 + $0x350] sm:$0xff] }
 0x351   : > { %v1439_v16 = vpop.permute.xlu1 %1438 }
 0x352   : > { %v1486_v41 = vsel %vm323_vm7, %v1439_v16, %v3318_v34  ;;  %v1337_v8 = vpop.permute.xlu2 %1336 }
 0x353   : > { %v1355_v37 = vpop.permute.xlu0 %1354  ;;  %v1377_v7 = vsel %vm314_vm8, %v3131_v51, %v1337_v8  ;;  %1882 = vmatpush.msrb.mxu2 %v1486_v41  ;;  %1419 = vst.msk [vmem:[#allocation3 + $0x568] sm:$0xff] %vm607_vm11, %v1337_v8 }
 0x354   : > { %v1383_v50 = vsel %vm314_vm8, %v3098_v24, %v1355_v37  ;;  %1428 = vst.msk [vmem:[#allocation3 + $0x5b0] sm:$0xff] %vm607_vm11, %v1355_v37  ;;  %2188 = vmatmul.msk.f32.vlgmr.msrb.gmra.mxu2 %vm1784_vm12, %v3338_v53 }
 0x355   : > { %1947 = vmatpush.msra.mxu2 %v3285_v39 }
 0x357   : > { %1948 = vmatpush.msra.mxu2 %v1387_v30 }
 0x359   : > { %1949 = vmatpush.msra.mxu2 %v1385_v3  ;;  %v1221_v36 = vpop.permute.xlu1 %1220 }
 0x35a   : > { %v1264_v6 = vsel %vm305_vm2, %v1221_v36, %v3327_v44  ;;  %v1255_v51 = vpop.permute.xlu2 %1254 }
 0x35b   : > { %1950 = vmatpush.msra.mxu2 %v1383_v50  ;;  %v1137_v14 = vpop.permute.xlu0 %1136  ;;  %v1275_v24 = vsel %vm305_vm2, %v3211_v46, %v1255_v51  ;;  %1861 = vmatpush.msra.mxu1 %v1264_v6  ;;  %1322 = vst.msk [vmem:[#allocation3 + $0x520] sm:$0xff] %vm607_vm11, %v1255_v51  ;;  %v1646_v50 = vld [vmem:[#allocation3 + $0x2f8] sm:$0xff] }
 0x35c   : > { %v1161_v39 = vsel %vm296_vm1, %v3061_v56, %v1137_v14  ;;  %1207 = vst.msk [vmem:[#allocation3 + $0x448] sm:$0xff] %vm607_vm11, %v1137_v14 }
 0x361   : > { %v1131_v40 = vpop.permute.xlu1 %1130 }
 0x362   : > { %v1159_v25 = vsel %vm296_vm1, %v3084_v29, %v1131_v40  ;;  %1204 = vst.msk [vmem:[#allocation3 + $0x430] sm:$0xff] %vm607_vm11, %v1131_v40  ;;  %v1479_v60 = vpop.permute.xlu2 %1478 }
 0x363   : > { %v1349_v26 = vpop.permute.xlu0 %1348  ;;  %v1499_v43 = vsel %vm323_vm7, %v3172_v63, %v1479_v60  ;;  %1546 = vst.msk [vmem:[#allocation3 + $0x6a0] sm:$0xff] %vm607_vm11, %v1479_v60  ;;  %v1694_v60 = vld [vmem:[#allocation3 + $0x478] sm:$0xff] }
 0x364   : > { %v1381_v46 = vsel %vm314_vm8, %v3167_v9, %v1349_v26  ;;  %1425 = vst.msk [vmem:[#allocation3 + $0x598] sm:$0xff] %vm607_vm11, %v1349_v26 }
 0x365   : > { %1951 = vmatpush.msra.mxu2 %v1381_v46  ;;  %v1628_v46 = vld [vmem:[#allocation3 + $0x268] sm:$0xff] }
 0x369   : > { %v1343_v56 = vpop.permute.xlu1 %1342 }
 0x36a   : > { %v1379_v18 = vsel %vm314_vm8, %v3195_v19, %v1343_v56  ;;  %1422 = vst.msk [vmem:[#allocation3 + $0x580] sm:$0xff] %vm607_vm11, %v1343_v56  ;;  %v1237_v29 = vpop.permute.xlu2 %1236  ;;  %v1691_v56 = vld [vmem:[#allocation3 + $0x460] sm:$0xff] }
 0x36b   : > { %v1217_v13 = vpop.permute.xlu0 %1216  ;;  %v3376_v63 = vsel %vm305_vm2, %v3288_v35, %v1237_v29  ;;  %1952 = vmatpush.msra.mxu2 %v1379_v18  ;;  %1313 = vst.msk [vmem:[#allocation3 + $0x4d8] sm:$0xff] %vm607_vm11, %v1237_v29 }
 0x36c   : > { %v1262_v9 = vsel %vm305_vm2, %v1215_v2, %v1217_v13  ;;  %v1763_v2 = vld [vmem:[#allocation3 + $0x6a0] sm:$0xff] }
 0x36d   : > { %1862 = vmatpush.msra.mxu1 %v1262_v9  ;;  %1953 = vmatpush.msra.mxu2 %v1377_v7  ;;  %v1648_v7 = vld [vmem:[#allocation3 + $0x308] sm:$0xff]  ;;  %v1622_v9 = vld [vmem:[#allocation3 + $0x238] sm:$0xff] }
 0x36e   : > { %1863 = vmatmul.f32.vlgmr.msra.gmra.mxu1 %v3372_v31 }
 0x36f   : > { %1927 = vmatpush.msrb.mxu1 %v3322_v45  ;;  %v1669_v45 = vld [vmem:[#allocation3 + $0x3b0] sm:$0xff] }
 0x371   : > { %v1261_v19 = vpop.permute.xlu1 %1260  ;;  %1928 = vmatpush.msrb.mxu1 %v1163_v20 }
 0x372   : > { %v1277_v15 = vsel %vm305_vm2, %v3242_v54, %v1261_v19  ;;  %1325 = vst.msk [vmem:[#allocation3 + $0x538] sm:$0xff] %vm607_vm11, %v1261_v19  ;;  %v1461_v35 = vpop.permute.xlu2 %1460  ;;  %v1678_v54 = vld [vmem:[#allocation3 + $0x3f8] sm:$0xff]  ;;  %v1619_v19 = vld [vmem:[#allocation3 + $0x220] sm:$0xff] }
 0x373   : > { %v1331_v27 = vpop.permute.xlu0 %1330  ;;  %v3387_v11 = vsel %vm323_vm7, %v3303_v48, %v1461_v35  ;;  %1929 = vmatpush.msrb.mxu1 %v1161_v39  ;;  %1537 = vst.msk [vmem:[#allocation3 + $0x658] sm:$0xff] %vm607_vm11, %v1461_v35  ;;  %v1637_v39 = vld [vmem:[#allocation3 + $0x2b0] sm:$0xff]  ;;  %v1742_v35 = vld [vmem:[#allocation3 + $0x5f8] sm:$0xff] }
 0x374   : > { %v1375_v55 = vsel %vm314_vm8, %v3227_v42, %v1331_v27  ;;  %1416 = vst.msk [vmem:[#allocation3 + $0x550] sm:$0xff] %vm607_vm11, %v1331_v27  ;;  %v1675_v42 = vld [vmem:[#allocation3 + $0x3e0] sm:$0xff] }
 0x375   : > { %1930 = vmatpush.msrb.mxu1 %v1159_v25  ;;  %1954 = vmatpush.msra.mxu2 %v1375_v55  ;;  %v1634_v25 = vld [vmem:[#allocation3 + $0x298] sm:$0xff]  ;;  %v1739_v55 = vld [vmem:[#allocation3 + $0x5e0] sm:$0xff] }
 0x377   : > { %1931 = vmatpush.msrb.mxu1 %v1681_v62  ;;  %1955 = vmatpush.msra.mxu2 %v1277_v15  ;;  %v1682_v15 = vld [vmem:[#allocation3 + $0x418] sm:$0xff]  ;;  %v1613_v62 = vld [vmem:[#allocation3 + $0x1f0] sm:$0xff] }
 0x379   : > { %v1249_v28 = vpop.permute.xlu1 %1248  ;;  %1932 = vmatpush.msrb.mxu1 %v1678_v54  ;;  %1956 = vmatpush.msra.mxu2 %v1275_v24 }
 0x37a   : > { %v1273_v48 = vsel %vm305_vm2, %v3290_v61, %v1249_v28  ;;  %1319 = vst.msk [vmem:[#allocation3 + $0x508] sm:$0xff] %vm607_vm11, %v1249_v28  ;;  %v1219_v49 = vpop.permute.xlu2 %1218  ;;  %v1666_v61 = vld [vmem:[#allocation3 + $0x398] sm:$0xff]  ;;  %v1676_v28 = vld [vmem:[#allocation3 + $0x3e8] sm:$0xff] }
 0x37b   : > { %v1485_v30 = vpop.permute.xlu0 %1484  ;;  %v3397_v5 = vsel %vm305_vm2, %v1217_v13, %v1219_v49  ;;  %1933 = vmatpush.msrb.mxu1 %v1675_v42  ;;  %1957 = vmatpush.msra.mxu2 %v1273_v48  ;;  %1304 = vst.msk [vmem:[#allocation3 + $0x490] sm:$0xff] %vm607_vm11, %v1219_v49  ;;  %v1754_v40 = vld [vmem:[#allocation3 + $0x658] sm:$0xff]  ;;  %v1625_v13 = vld [vmem:[#allocation3 + $0x250] sm:$0xff]  ;;  %v1736_v48 = vld [vmem:[#allocation3 + $0x5c8] sm:$0xff] }
 0x37c   : > { %v1501_v32 = vsel %vm323_vm7, %v3209_v0, %v1485_v30  ;;  %1549 = vst.msk [vmem:[#allocation3 + $0x6b8] sm:$0xff] %vm607_vm11, %v1485_v30  ;;  %v1610_v49 = vld [vmem:[#allocation3 + $0x1d8] sm:$0xff]  ;;  %v1673_v42 = vld [vmem:[#allocation3 + $0x3d0] sm:$0xff] }
 0x37d   : > { %1934 = vmatpush.msrb.mxu1 %v1672_v58  ;;  %1975 = vmatpush.msrb.mxu3 %v1501_v32  ;;  %v1733_v30 = vld [vmem:[#allocation3 + $0x5b0] sm:$0xff]  ;;  %v1670_v32 = vld [vmem:[#allocation3 + $0x3b8] sm:$0xff] }
 0x37e   : > { %v1730_v58 = vld [vmem:[#allocation3 + $0x598] sm:$0xff] }
 0x37f   : > { %1935 = vmatpush.msrb.mxu1 %v1669_v45  ;;  %1976 = vmatpush.msrb.mxu3 %v1499_v43  ;;  %v1604_v45 = vld [vmem:[#allocation3 + $0x1a8] sm:$0xff] }
 0x381   : > { %v1473_v33 = vpop.permute.xlu1 %1472  ;;  %1936 = vmatpush.msrb.mxu1 %v1666_v61  ;;  %v1667_v61 = vld [vmem:[#allocation3 + $0x3a0] sm:$0xff] }
 0x382   : > { %v1497_v12 = vsel %vm323_vm7, %v3260_v23, %v1473_v33  ;;  %1543 = vst.msk [vmem:[#allocation3 + $0x688] sm:$0xff] %vm607_vm11, %v1473_v33  ;;  %v1654_v23 = vld [vmem:[#allocation3 + $0x338] sm:$0xff]  ;;  %v1727_v33 = vld [vmem:[#allocation3 + $0x580] sm:$0xff] }
 0x383   : > { %v1243_v0 = vpop.permute.xlu0 %1242  ;;  %v1766_v3 = vld [vmem:[#allocation3 + $0x6b8] sm:$0xff]  ;;  %1937 = vmatpush.msrb.mxu1 %v1663_v59  ;;  %1977 = vmatpush.msrb.mxu3 %v1497_v12  ;;  %v1601_v12 = vld [vmem:[#allocation3 + $0x190] sm:$0xff]  ;;  %v1664_v59 = vld [vmem:[#allocation3 + $0x388] sm:$0xff] }
 0x384   : > { %v1271_v22 = vsel %vm305_vm2, %v3258_v38, %v1243_v0  ;;  %1316 = vst.msk [vmem:[#allocation3 + $0x4f0] sm:$0xff] %vm607_vm11, %v1243_v0  ;;  %2075 = vmatpush.msra.mxu0 %v1766_v3  ;;  %v1651_v38 = vld [vmem:[#allocation3 + $0x320] sm:$0xff]  ;;  %v1724_v0 = vld [vmem:[#allocation3 + $0x568] sm:$0xff]  ;;  %v1721_v3 = vld [vmem:[#allocation3 + $0x550] sm:$0xff] }
 0x385   : > { %1938 = vmatpush.msrb.mxu1 %v1660_v4  ;;  %1958 = vmatpush.msra.mxu2 %v1271_v22  ;;  %v1658_v22 = vld [vmem:[#allocation3 + $0x358] sm:$0xff] }
 0x386   : > { %2076 = vmatpush.msra.mxu0 %v1763_v2  ;;  %v1718_v4 = vld [vmem:[#allocation3 + $0x538] sm:$0xff]  ;;  %v1655_v2 = vld [vmem:[#allocation3 + $0x340] sm:$0xff] }
 0x387   : > { %1939 = vmatpush.msrb.mxu1 %v1657_v17  ;;  %1959 = vmatpush.msra.mxu2 %v3376_v63  ;;  %v1688_v63 = vld [vmem:[#allocation3 + $0x448] sm:$0xff]  ;;  %v1715_v17 = vld [vmem:[#allocation3 + $0x520] sm:$0xff] }
 0x389   : > { %v1231_v20 = vpop.permute.xlu1 %1230  ;;  %v1760_v16 = vld [vmem:[#allocation3 + $0x688] sm:$0xff]  ;;  %1940 = vmatpush.msrb.mxu1 %v1654_v23 }
 0x38a   : > { %v1267_v41 = vsel %vm305_vm2, %v3311_v1, %v1231_v20  ;;  %1310 = vst.msk [vmem:[#allocation3 + $0x4c0] sm:$0xff] %vm607_vm11, %v1231_v20  ;;  %2077 = vmatpush.msra.mxu0 %v1760_v16  ;;  %v1643_v1 = vld [vmem:[#allocation3 + $0x2e0] sm:$0xff]  ;;  %v1652_v23 = vld [vmem:[#allocation3 + $0x328] sm:$0xff] }
 0x38b   : > { %v1467_v8 = vpop.permute.xlu0 %1466  ;;  %1941 = vmatpush.msrb.mxu1 %v1651_v38  ;;  %1960 = vmatpush.msra.mxu2 %v1267_v41  ;;  %v1712_v20 = vld [vmem:[#allocation3 + $0x508] sm:$0xff]  ;;  %v1709_v16 = vld [vmem:[#allocation3 + $0x4f0] sm:$0xff]  ;;  %v1706_v41 = vld [vmem:[#allocation3 + $0x4d8] sm:$0xff] }
 0x38c   : > { %v1495_v37 = vsel %vm323_vm7, %v3271_v47, %v1467_v8  ;;  %1540 = vst.msk [vmem:[#allocation3 + $0x670] sm:$0xff] %vm607_vm11, %v1467_v8  ;;  %v1640_v47 = vld [vmem:[#allocation3 + $0x2c8] sm:$0xff] }
 0x38d   : > { %1942 = vmatpush.msrb.mxu1 %v1648_v7  ;;  %1978 = vmatpush.msrb.mxu3 %v1495_v37  ;;  %v1697_v37 = vld [vmem:[#allocation3 + $0x490] sm:$0xff]  ;;  %v1804_v7 = vpop.f32.mrf.mxu3 }
 0x38e   : > { %1943 = vmatmul.f32.vlgmr.msrb.gmra.mxu1 %v3184_v57 }
 0x38f   : > { %2007 = vmatpush.msra.mxu1 %v1646_v50  ;;  %1979 = vmatpush.msrb.mxu3 %v3387_v11  ;;  %v1679_v11 = vld [vmem:[#allocation3 + $0x400] sm:$0xff] }
 0x391   : > { %v1455_v36 = vpop.permute.xlu1 %1454  ;;  %2008 = vmatpush.msra.mxu1 %v1643_v1  ;;  %v1703_v38 = vld [vmem:[#allocation3 + $0x4c0] sm:$0xff]  ;;  %v1844_v1 = vpop.f32.mrf.mxu0 }
 0x392   : > { %v1491_v6 = vsel %vm323_vm7, %v3273_v21, %v1455_v36  ;;  %1534 = vst.msk [vmem:[#allocation3 + $0x640] sm:$0xff] %vm607_vm11, %v1455_v36  ;;  %v1631_v21 = vld [vmem:[#allocation3 + $0x280] sm:$0xff] }
 0x393   : > { %v1225_v51 = vpop.permute.xlu0 %1224  ;;  %v1757_v14 = vld [vmem:[#allocation3 + $0x670] sm:$0xff]  ;;  %2009 = vmatpush.msra.mxu1 %v1640_v47  ;;  %1980 = vmatpush.msrb.mxu3 %v1491_v6  ;;  %v1771_v47 = vpop.permute.xlu2 %1770 }
 0x394   : > { %v1265_v24 = vsel %vm305_vm2, %v3327_v44, %v1225_v51  ;;  %1307 = vst.msk [vmem:[#allocation3 + $0x4a8] sm:$0xff] %vm607_vm11, %v1225_v51  ;;  %2078 = vmatpush.msra.mxu0 %v1757_v14  ;;  %v1773_v51 = vperm.slane %v1771_v47, 0 }
 0x395   : > { %2010 = vmatpush.msra.mxu1 %v1637_v39  ;;  %1961 = vmatpush.msra.mxu2 %v1265_v24  ;;  %v1824_v50 = vpop.f32.mrf.mxu3 }
 0x396   : > { %2079 = vmatpush.msra.mxu0 %v1754_v40  ;;  %v1805_v39 = vadd.f32 %v1804_v7, %v1773_v51 }
 0x397   : > { %2011 = vmatpush.msra.mxu1 %v1634_v25  ;;  %1962 = vmatpush.msra.mxu2 %v3397_v5  ;;  %v1607_v5 = vld [vmem:[#allocation3 + $0x1c0] sm:$0xff] }
 0x398   : > { %1963 = vmatmul.f32.vlgmr.msra.gmra.mxu2 %v3372_v31 }
 0x399   : > { %v1443_v26 = vpop.permute.xlu1 %1442  ;;  %v1751_v43 = vld [vmem:[#allocation3 + $0x640] sm:$0xff]  ;;  %2012 = vmatpush.msra.mxu1 %v1631_v21  ;;  %2027 = vmatpush.msrb.mxu2 %v1694_v60  ;;  %v1924_v24 = vpop.f32.mrf.mxu0  ;;  %v1825_v60 = vadd.f32 %v1824_v50, %v1805_v39 }
 0x39a   : > { %v1487_v44 = vsel %vm323_vm7, %v3318_v34, %v1443_v26  ;;  %1528 = vst.msk [vmem:[#allocation3 + $0x610] sm:$0xff] %vm607_vm11, %v1443_v26  ;;  %2080 = vmatpush.msra.mxu0 %v1751_v43  ;;  %v1685_v34 = vld [vmem:[#allocation3 + $0x430] sm:$0xff] }
 0x39b   : > { %v1449_v18 = vpop.permute.xlu0 %1448  ;;  %2013 = vmatpush.msra.mxu1 %v1628_v46  ;;  %2028 = vmatpush.msrb.mxu2 %v1691_v56  ;;  %v1700_v8 = vld [vmem:[#allocation3 + $0x4a8] sm:$0xff] }
 0x39c   : > { %v1489_v29 = vsel %vm323_vm7, %v3301_v10, %v1449_v18  ;;  %1531 = vst.msk [vmem:[#allocation3 + $0x628] sm:$0xff] %vm607_vm11, %v1449_v18  ;;  %v1616_v10 = vld [vmem:[#allocation3 + $0x208] sm:$0xff]  ;;  %v1845_v18 = vadd.f32 %v1844_v1, %v1825_v60 }
 0x39d   : > { %2014 = vmatpush.msra.mxu1 %v1625_v13  ;;  %2029 = vmatpush.msrb.mxu2 %v1688_v63  ;;  %v1904_v14 = vpop.f32.mrf.mxu3 }
 0x39e   : > { %1981 = vmatpush.msrb.mxu3 %v1489_v29  ;;  %v1905_v40 = vadd.f32 %v1904_v14, %v1773_v51 }
 0x39f   : > { %2015 = vmatpush.msra.mxu1 %v1622_v9  ;;  %2030 = vmatpush.msrb.mxu2 %v1685_v34 }
 0x3a0   : > { %1982 = vmatpush.msrb.mxu3 %v1487_v44  ;;  %v1925_v21 = vadd.f32 %v1924_v24, %v1905_v40 }
 0x3a1   : > { %2016 = vmatpush.msra.mxu1 %v1619_v19  ;;  %2189 = vmatmul.msk.f32.vlgmr.msrb.gmra.mxu3 %vm1784_vm12, %v3338_v53  ;;  %v1745_v54 = vld [vmem:[#allocation3 + $0x610] sm:$0xff] }
 0x3a2   : > { %2031 = vmatpush.msrb.mxu2 %v1682_v15  ;;  %2047 = vmatpush.msra.mxu3 %v1742_v35 }
 0x3a3   : > { %v1748_v27 = vld [vmem:[#allocation3 + $0x628] sm:$0xff]  ;;  %2017 = vmatpush.msra.mxu1 %v1616_v10 }
 0x3a4   : > { %2081 = vmatpush.msra.mxu0 %v1748_v27  ;;  %2032 = vmatpush.msrb.mxu2 %v1679_v11 }
 0x3a5   : > { %2048 = vmatpush.msra.mxu3 %v1739_v55  ;;  %2018 = vmatpush.msra.mxu1 %v1613_v62 }
 0x3a6   : > { %2082 = vmatpush.msra.mxu0 %v1745_v54  ;;  %2033 = vmatpush.msrb.mxu2 %v1676_v28 }
 0x3a7   : > { %2049 = vmatpush.msra.mxu3 %v1736_v48  ;;  %2019 = vmatpush.msra.mxu1 %v1610_v49  ;;  %v3480_v48 = vlaneseq }
 0x3a8   : > { %2034 = vmatpush.msrb.mxu2 %v1673_v42  ;;  %2190 = vmatmul.msk.f32.vlgmr.msra.gmra.mxu0 %vm1784_vm12, %v3338_v53  ;;  %v1661_v53 = vld [vmem:[#allocation3 + $0x370] sm:$0xff] }
 0x3a9   : > { %2050 = vmatpush.msra.mxu3 %v1733_v30  ;;  %2020 = vmatpush.msra.mxu1 %v1607_v5  ;;  %vm2099_vm14 = vcmp.lt.s32.totalorder %v3480_v48, 324 }
 0x3aa   : > { %2035 = vmatpush.msrb.mxu2 %v1670_v32 }
 0x3ab   : > { %2051 = vmatpush.msra.mxu3 %v1730_v58  ;;  %2021 = vmatpush.msra.mxu1 %v1604_v45 }
 0x3ac   : > { %2036 = vmatpush.msrb.mxu2 %v1667_v61 }
 0x3ad   : > { %2052 = vmatpush.msra.mxu3 %v1727_v33  ;;  %2022 = vmatpush.msra.mxu1 %v1601_v12  ;;  %v2004_v26 = vpop.f32.mrf.mxu0 }
 0x3ae   : > { %2023 = vmatmul.f32.vlgmr.msra.gmra.mxu1 %v3145_v52  ;;  %2037 = vmatpush.msrb.mxu2 %v1664_v59  ;;  %v1649_v52 = vld [vmem:[#allocation3 + $0x310] sm:$0xff]  ;;  %v2005_v56 = vadd.f32 %v2004_v26, %v1773_v51 }
 0x3af   : > { %2053 = vmatpush.msra.mxu3 %v1724_v0 }
 0x3b0   : > { %2038 = vmatpush.msrb.mxu2 %v1661_v53 }
 0x3b1   : > { %2054 = vmatpush.msra.mxu3 %v1721_v3 }
 0x3b2   : > { %2039 = vmatpush.msrb.mxu2 %v1658_v22 }
 0x3b3   : > { %2055 = vmatpush.msra.mxu3 %v1718_v4 }
 0x3b4   : > { %2040 = vmatpush.msrb.mxu2 %v1655_v2 }
 0x3b5   : > { %2056 = vmatpush.msra.mxu3 %v1715_v17 }
 0x3b6   : > { %2041 = vmatpush.msrb.mxu2 %v1652_v23 }
 0x3b7   : > { %2057 = vmatpush.msra.mxu3 %v1712_v20 }
 0x3b8   : > { %2042 = vmatpush.msrb.mxu2 %v1649_v52 }
 0x3b9   : > { %2058 = vmatpush.msra.mxu3 %v1709_v16  ;;  %2043 = vmatmul.f32.vlgmr.msrb.gmra.mxu2 %v3184_v57 }
 0x3bb   : > { %2059 = vmatpush.msra.mxu3 %v1706_v41 }
 0x3bd   : > { %2060 = vmatpush.msra.mxu3 %v1703_v38 }
 0x3bf   : > { %2061 = vmatpush.msra.mxu3 %v1700_v8 }
 0x3c1   : > { %2062 = vmatpush.msra.mxu3 %v1697_v37 }
 0x3c2   : > { %2063 = vmatmul.f32.vlgmr.msra.gmra.mxu3 %v3372_v31 }
 0x3d7   : > { %v1884_v6 = vpop.f32.mrf.mxu2 }
 0x3eb   : > { %v1864_v36 = vpop.f32.mrf.mxu1 }
 0x3ec   : > { %v1865_v9 = vadd.f32 %v1864_v36, %v1845_v18 }
 0x3ee   : > { %v1885_v27 = vadd.f32 %v1884_v6, %v1865_v9 }
 0x3f0   : > { %v2087_v54 = vmax.f32 %v1885_v27, 0.0 }
 0x40b   : > { %v1944_v57 = vpop.f32.mrf.mxu1 }
 0x40c   : > { %v1945_v43 = vadd.f32 %v1944_v57, %v1925_v21 }
 0x41b   : > { %v1964_v25 = vpop.f32.mrf.mxu2 }
 0x41c   : > { %v1965_v31 = vadd.f32 %v1964_v25, %v1945_v43 }
 0x424   : > { %v1984_v44 = vpop.f32.mrf.mxu3 }
 0x425   : > { %v1985_v29 = vadd.f32 %v1984_v44, %v1965_v31  ;;  %v2084_v35 = vpop.f32.mrf.mxu0 }
 0x427   : > { %v2088_v19 = vmax.f32 %v1985_v29, 0.0 }
 0x429   : > { %v2093_v55 = vrot.slane %v2088_v19, 7 }
 0x42b   : > { %v2024_v46 = vpop.f32.mrf.mxu1  ;;  %v2095_v49 = vsel %vm416_vm9, %v2087_v54, %v2093_v55 }
 0x42c   : > { %v2025_v63 = vadd.f32 %v2024_v46, %v2005_v56 }
 0x43c   : > { %v2044_v13 = vpop.f32.mrf.mxu2 }
 0x43d   : > { %v2045_v34 = vadd.f32 %v2044_v13, %v2025_v63 }
 0x445   : > { %v2064_v15 = vpop.f32.mrf.mxu3 }
 0x446   : > { %v2065_v10 = vadd.f32 %v2064_v15, %v2045_v34 }
 0x448   : > { %v2085_v11 = vadd.f32 %v2084_v35, %v2065_v10 }
 0x44a   : > { %v2089_v62 = vmax.f32 %v2085_v11, 0.0 }
 0x44c   : > { %v2094_v28 = vrot.slane %v2089_v62, 6 }
 0x44e   : > { %v2097_v42 = vsel %vm2096_vm13, %v2095_v49, %v2094_v28 }
 0x44f   : > { %2101 = vst.msk [vmem:[%s248_s9] sm:$0x7] %vm2099_vm14, %v2097_v42 }
 0x450 PF: > { %s18_s23 = sadd.s32 1, %s2230_s23  }
 0x451   : > { %p15_p4 = scmp.ge.s32.totalorder %s18_s23, 4  }
 0x453   :  { %17 = sbr.rel (!%p15_p4) target bundleno = 3 (0x3), region = 82 }

</bundles_post_ra>
